<compile_context>
chip_gen: v7x
topology: tpu7x:2x2x1
jax: 0.10.0
libtpu: 0.0.40
codegen_flags: <defaults>
</compile_context>

<pallas_src>
import functools

import jax
import jax.numpy as jnp
from jax.experimental import pallas as pl
from jax.experimental.pallas import tpu as pltpu

LATENT = 2
IN_FEATS = 28 * 28       # 784
IN_PAD = 896             # 784 -> 7*128 (lane aligned, 12.5% pad instead of 23% at 1024)
HID1 = 512
HID2 = 256
HEAD_W = 128             # fused lane-dense head width; mean @ [:latent], logvar @ [latent:2*latent]
TM_MAX = 512             # max batch tile per grid step


def _round_up(n, m):
    return ((n + m - 1) // m) * m


def _pick_tile(batch):
    """Adaptive batch tile: small for tiny batches, >=2 tiles for megacore."""
    b128 = _round_up(max(batch, 1), 128)
    if b128 <= 128:
        return 128
    # Guarantee at least two grid steps (both v7x TensorCores busy), cap at TM_MAX.
    return min(TM_MAX, _round_up((b128 + 1) // 2, 128))


def encoder_kernel(x_ref, w1_ref, b1_ref, w2_ref, b2_ref, wh_ref, bh_ref, out_ref):
    # x_ref: (TM, IN_PAD) bf16 ; weights bf16 ; biases f32 ; out f32
    x = x_ref[...]

    # Linear(784 -> 512) + ReLU   (f32 accumulate, bf16 carry)
    h1 = jnp.dot(x, w1_ref[...], preferred_element_type=jnp.float32) + b1_ref[...]
    h1 = jnp.maximum(h1, 0.0).astype(jnp.bfloat16)

    # Linear(512 -> 256) + ReLU
    h2 = jnp.dot(h1, w2_ref[...], preferred_element_type=jnp.float32) + b2_ref[...]
    h2 = jnp.maximum(h2, 0.0).astype(jnp.bfloat16)

    # Fused heads: one (256 -> 128) matmul; mean in cols [:latent],
    # logvar in cols [latent:2*latent], remaining columns zero-weighted padding.
    out_ref[...] = (jnp.dot(h2, wh_ref[...], preferred_element_type=jnp.float32)
                    + bh_ref[...])


def init_params(key, latent=LATENT):
    """Deterministic PyTorch-Linear-shaped params (W: (out, in), b: (out,))."""
    ks = jax.random.split(key, 8)

    def lin(kw, kb, fan_in, fan_out):
        bound = 1.0 / jnp.sqrt(fan_in)
        w = jax.random.uniform(kw, (fan_out, fan_in), jnp.float32, -bound, bound)
        b = jax.random.uniform(kb, (fan_out,), jnp.float32, -bound, bound)
        return w, b

    w1, b1 = lin(ks[0], ks[1], IN_FEATS, HID1)
    w2, b2 = lin(ks[2], ks[3], HID1, HID2)
    wm, bm = lin(ks[4], ks[5], HID2, latent)
    wv, bv = lin(ks[6], ks[7], HID2, latent)
    return dict(w1=w1, b1=b1, w2=w2, b2=b2, wm=wm, bm=bm, wv=wv, bv=bv)


def _prepare_weights(params, latent):
    """Transpose to (in, out), pad K of layer 1, fuse heads contiguously, cast to bf16."""
    w1t = jnp.zeros((IN_PAD, HID1), jnp.bfloat16)
    w1t = w1t.at[:IN_FEATS, :].set(params["w1"].T.astype(jnp.bfloat16))   # (896, 512)
    b1 = params["b1"][None, :].astype(jnp.float32)                        # (1, 512)

    w2t = params["w2"].T.astype(jnp.bfloat16)                             # (512, 256)
    b2 = params["b2"][None, :].astype(jnp.float32)                        # (1, 256)

    wh = jnp.zeros((HID2, HEAD_W), jnp.float32)
    wh = wh.at[:, :latent].set(params["wm"].T)
    wh = wh.at[:, latent:2 * latent].set(params["wv"].T)
    wh = wh.astype(jnp.bfloat16)                                          # (256, 128)

    bh = jnp.zeros((1, HEAD_W), jnp.float32)
    bh = bh.at[0, :latent].set(params["bm"])
    bh = bh.at[0, latent:2 * latent].set(params["bv"])
    return w1t, b1, w2t, b2, wh, bh


@functools.partial(jax.jit, static_argnames=("latent",))
def encoder_forward(x_nchw, params, latent=LATENT):
    assert 2 * latent <= HEAD_W
    B = x_nchw.shape[0]

    tm = _pick_tile(B)
    B_pad = _round_up(B, tm)

    # Flatten NCHW -> (B, 784), cast to bf16 FIRST, then one padded bf16 copy.
    x = x_nchw.reshape(B, -1).astype(jnp.bfloat16)
    assert x.shape[1] == IN_FEATS
    x = jnp.zeros((B_pad, IN_PAD), jnp.bfloat16).at[:B, :IN_FEATS].set(x)

    w1t, b1, w2t, b2, wh, bh = _prepare_weights(params, latent)

    grid = (B_pad // tm,)
    resident = lambda shape: pl.BlockSpec(shape, lambda i: (0, 0))

    flops = 2 * B_pad * (IN_PAD * HID1 + HID1 * HID2 + HID2 * HEAD_W)
    bytes_accessed = (B_pad * IN_PAD * 2                       # x (bf16)
                      + (w1t.size + w2t.size + wh.size) * 2    # weights (bf16)
                      + (b1.size + b2.size + bh.size) * 4      # biases (f32)
                      + B_pad * HEAD_W * 4)                    # output (f32)

    out = pl.pallas_call(
        encoder_kernel,
        out_shape=jax.ShapeDtypeStruct((B_pad, HEAD_W), jnp.float32),
        grid=grid,
        in_specs=[
            pl.BlockSpec((tm, IN_PAD), lambda i: (i, 0)),      # x tile (pipelined)
            resident((IN_PAD, HID1)),                          # w1 (VMEM-resident)
            resident((1, HID1)),                               # b1
            resident((HID1, HID2)),                            # w2
            resident((1, HID2)),                               # b2
            resident((HID2, HEAD_W)),                          # fused head weight
            resident((1, HEAD_W)),                             # fused head bias
        ],
        out_specs=pl.BlockSpec((tm, HEAD_W), lambda i: (i, 0)),
        compiler_params=pltpu.CompilerParams(
            dimension_semantics=("parallel",)),
        cost_estimate=pl.CostEstimate(flops=flops, transcendentals=0,
                                      bytes_accessed=bytes_accessed),
    )(x, w1t, b1, w2t, b2, wh, bh)

    packed = out[:B, :2 * latent]
    mean = packed[:, :latent]
    logvar = packed[:, latent:2 * latent]
    return mean, logvar


def encoder_forward_ref_bf16(x_nchw, params, latent=LATENT):
    """Pure-JAX reference matching the kernel's numerics (bf16 weights, f32 acc)."""
    B = x_nchw.shape[0]
    x = x_nchw.reshape(B, -1).astype(jnp.bfloat16)
    w1 = params["w1"].T.astype(jnp.bfloat16)
    w2 = params["w2"].T.astype(jnp.bfloat16)
    wm = params["wm"].T.astype(jnp.bfloat16)
    wv = params["wv"].T.astype(jnp.bfloat16)
    h1 = jnp.maximum(jnp.dot(x, w1, preferred_element_type=jnp.float32)
                     + params["b1"][None, :], 0.0).astype(jnp.bfloat16)
    h2 = jnp.maximum(jnp.dot(h1, w2, preferred_element_type=jnp.float32)
                     + params["b2"][None, :], 0.0).astype(jnp.bfloat16)
    mean = jnp.dot(h2, wm, preferred_element_type=jnp.float32) + params["bm"][None, :]
    logvar = jnp.dot(h2, wv, preferred_element_type=jnp.float32) + params["bv"][None, :]
    return mean, logvar


def encoder_forward_ref_f32(x_nchw, params):
    """Full-precision reference of the PyTorch forward (sanity only)."""
    B = x_nchw.shape[0]
    x = x_nchw.reshape(B, -1).astype(jnp.float32)
    h1 = jnp.maximum(x @ params["w1"].T + params["b1"], 0.0)
    h2 = jnp.maximum(h1 @ params["w2"].T + params["b2"], 0.0)
    return h2 @ params["wm"].T + params["bm"], h2 @ params["wv"].T + params["bv"]


if __name__ == "__main__":
    key = jax.random.PRNGKey(0)
    kx, kp = jax.random.split(key)

    # Small deterministic input consistent with the module: NCHW (B=2, C=1, 28, 28)
    x = jax.random.normal(kx, (2, 1, 28, 28), dtype=jnp.float32)
    params = init_params(kp, latent=LATENT)

    mean, logvar = encoder_forward(x, params, latent=LATENT)
    jax.block_until_ready((mean, logvar))

    assert mean.shape == (2, LATENT) and logvar.shape == (2, LATENT)

    # Exact-numerics reference (bf16 weights, f32 accumulation)
    mean_r, logvar_r = encoder_forward_ref_bf16(x, params, latent=LATENT)
    assert jnp.allclose(mean, mean_r, atol=1e-3, rtol=1e-3)
    assert jnp.allclose(logvar, logvar_r, atol=1e-3, rtol=1e-3)

    # Loose sanity check against the full-f32 PyTorch-equivalent forward
    mean_f, logvar_f = encoder_forward_ref_f32(x, params)
    assert jnp.allclose(mean, mean_f, atol=5e-2, rtol=5e-2)
    assert jnp.allclose(logvar, logvar_f, atol=5e-2, rtol=5e-2)

    print("KERNEL_OK")
</pallas_src>

<mosaic_0001>
module attributes {stable_mosaic.version = 11 : i64} {
  func.func @encoder_kernel(%arg0: i32, %arg1: memref<128x896xbf16, #tpu.memory_space<vmem>>, %arg2: memref<896x512xbf16, #tpu.memory_space<vmem>>, %arg3: memref<1x512xf32, #tpu.memory_space<vmem>>, %arg4: memref<512x256xbf16, #tpu.memory_space<vmem>>, %arg5: memref<1x256xf32, #tpu.memory_space<vmem>>, %arg6: memref<256x128xbf16, #tpu.memory_space<vmem>>, %arg7: memref<1x128xf32, #tpu.memory_space<vmem>>, %arg8: memref<128x128xf32, #tpu.memory_space<vmem>>) attributes {dimension_semantics = [#tpu.dimension_semantics<parallel>], iteration_bounds = array<i64: 1>, scalar_prefetch = 0 : i64, scratch_operands = 0 : i64, tpu.core_type = #tpu.core_type<tc>, window_params = [{transform_indices = @transform_0, window_bounds = array<i64: 128, 896>}, {pipeline_mode = #tpu.pipeline_mode<synchronous>, transform_indices = @transform_1, window_bounds = array<i64: 896, 512>}, {pipeline_mode = #tpu.pipeline_mode<synchronous>, transform_indices = @transform_2, window_bounds = array<i64: 1, 512>}, {pipeline_mode = #tpu.pipeline_mode<synchronous>, transform_indices = @transform_3, window_bounds = array<i64: 512, 256>}, {pipeline_mode = #tpu.pipeline_mode<synchronous>, transform_indices = @transform_4, window_bounds = array<i64: 1, 256>}, {pipeline_mode = #tpu.pipeline_mode<synchronous>, transform_indices = @transform_5, window_bounds = array<i64: 256, 128>}, {pipeline_mode = #tpu.pipeline_mode<synchronous>, transform_indices = @transform_6, window_bounds = array<i64: 1, 128>}, {transform_indices = @transform_7, window_bounds = array<i64: 128, 128>}]} {
    %c0 = arith.constant 0 : index
    %c0_0 = arith.constant 0 : index
    %0 = vector.load %arg1[%c0, %c0_0] : memref<128x896xbf16, #tpu.memory_space<vmem>>, vector<128x896xbf16>
    %c0_1 = arith.constant 0 : index
    %c0_2 = arith.constant 0 : index
    %1 = vector.load %arg2[%c0_1, %c0_2] : memref<896x512xbf16, #tpu.memory_space<vmem>>, vector<896x512xbf16>
    %cst = arith.constant dense<0.000000e+00> : vector<128x512xf32>
    %2 = tpu.matmul %0, %1, %cst {dimension_numbers = #tpu.dot_dimension_numbers<[1], [0], [0], [1], [0, 0, 1, 1], [], []>} : vector<128x896xbf16>, vector<896x512xbf16>, vector<128x512xf32> -> vector<128x512xf32>
    %c0_3 = arith.constant 0 : index
    %c0_4 = arith.constant 0 : index
    %3 = vector.load %arg3[%c0_3, %c0_4] : memref<1x512xf32, #tpu.memory_space<vmem>>, vector<1x512xf32>
    %4 = vector.broadcast %3 : vector<1x512xf32> to vector<128x512xf32>
    %5 = arith.addf %2, %4 : vector<128x512xf32>
    %cst_5 = arith.constant 0.000000e+00 : f32
    %6 = vector.broadcast %cst_5 : f32 to vector<128x512xf32>
    %7 = arith.maximumf %5, %6 : vector<128x512xf32>
    %8 = arith.truncf %7 : vector<128x512xf32> to vector<128x512xbf16>
    %c0_6 = arith.constant 0 : index
    %c0_7 = arith.constant 0 : index
    %9 = vector.load %arg4[%c0_6, %c0_7] : memref<512x256xbf16, #tpu.memory_space<vmem>>, vector<512x256xbf16>
    %cst_8 = arith.constant dense<0.000000e+00> : vector<128x256xf32>
    %10 = tpu.matmul %8, %9, %cst_8 {dimension_numbers = #tpu.dot_dimension_numbers<[1], [0], [0], [1], [0, 0, 1, 1], [], []>} : vector<128x512xbf16>, vector<512x256xbf16>, vector<128x256xf32> -> vector<128x256xf32>
    %c0_9 = arith.constant 0 : index
    %c0_10 = arith.constant 0 : index
    %11 = vector.load %arg5[%c0_9, %c0_10] : memref<1x256xf32, #tpu.memory_space<vmem>>, vector<1x256xf32>
    %12 = vector.broadcast %11 : vector<1x256xf32> to vector<128x256xf32>
    %13 = arith.addf %10, %12 : vector<128x256xf32>
    %cst_11 = arith.constant 0.000000e+00 : f32
    %14 = vector.broadcast %cst_11 : f32 to vector<128x256xf32>
    %15 = arith.maximumf %13, %14 : vector<128x256xf32>
    %16 = arith.truncf %15 : vector<128x256xf32> to vector<128x256xbf16>
    %c0_12 = arith.constant 0 : index
    %c0_13 = arith.constant 0 : index
    %17 = vector.load %arg6[%c0_12, %c0_13] : memref<256x128xbf16, #tpu.memory_space<vmem>>, vector<256x128xbf16>
    %cst_14 = arith.constant dense<0.000000e+00> : vector<128x128xf32>
    %18 = tpu.matmul %16, %17, %cst_14 {dimension_numbers = #tpu.dot_dimension_numbers<[1], [0], [0], [1], [0, 0, 1, 1], [], []>} : vector<128x256xbf16>, vector<256x128xbf16>, vector<128x128xf32> -> vector<128x128xf32>
    %c0_15 = arith.constant 0 : index
    %c0_16 = arith.constant 0 : index
    %19 = vector.load %arg7[%c0_15, %c0_16] : memref<1x128xf32, #tpu.memory_space<vmem>>, vector<1x128xf32>
    %20 = vector.broadcast %19 : vector<1x128xf32> to vector<128x128xf32>
    %21 = arith.addf %18, %20 : vector<128x128xf32>
    %c0_17 = arith.constant 0 : index
    %c0_18 = arith.constant 0 : index
    %22 = vector.load %arg8[%c0_17, %c0_18] : memref<128x128xf32, #tpu.memory_space<vmem>>, vector<128x128xf32>
    tpu.vector_store %arg8[%c0_17, %c0_18], %21 {strides = array<i32>} : memref<128x128xf32, #tpu.memory_space<vmem>>, vector<128x128xf32>,
    return
  }
  func.func @transform_0(%arg0: i32) -> (i32, i32) {
    %c0_i32 = arith.constant 0 : i32
    %c0_i32_0 = arith.constant 0 : i32
    return %arg0, %c0_i32 : i32, i32
  }
  func.func @transform_1(%arg0: i32) -> (i32, i32) {
    %c0_i32 = arith.constant 0 : i32
    %c0_i32_0 = arith.constant 0 : i32
    %c0_i32_1 = arith.constant 0 : i32
    return %c0_i32, %c0_i32_0 : i32, i32
  }
  func.func @transform_2(%arg0: i32) -> (i32, i32) {
    %c0_i32 = arith.constant 0 : i32
    %c0_i32_0 = arith.constant 0 : i32
    %c0_i32_1 = arith.constant 0 : i32
    return %c0_i32, %c0_i32_0 : i32, i32
  }
  func.func @transform_3(%arg0: i32) -> (i32, i32) {
    %c0_i32 = arith.constant 0 : i32
    %c0_i32_0 = arith.constant 0 : i32
    %c0_i32_1 = arith.constant 0 : i32
    return %c0_i32, %c0_i32_0 : i32, i32
  }
  func.func @transform_4(%arg0: i32) -> (i32, i32) {
    %c0_i32 = arith.constant 0 : i32
    %c0_i32_0 = arith.constant 0 : i32
    %c0_i32_1 = arith.constant 0 : i32
    return %c0_i32, %c0_i32_0 : i32, i32
  }
  func.func @transform_5(%arg0: i32) -> (i32, i32) {
    %c0_i32 = arith.constant 0 : i32
    %c0_i32_0 = arith.constant 0 : i32
    %c0_i32_1 = arith.constant 0 : i32
    return %c0_i32, %c0_i32_0 : i32, i32
  }
  func.func @transform_6(%arg0: i32) -> (i32, i32) {
    %c0_i32 = arith.constant 0 : i32
    %c0_i32_0 = arith.constant 0 : i32
    %c0_i32_1 = arith.constant 0 : i32
    return %c0_i32, %c0_i32_0 : i32, i32
  }
  func.func @transform_7(%arg0: i32) -> (i32, i32) {
    %c0_i32 = arith.constant 0 : i32
    %c0_i32_0 = arith.constant 0 : i32
    return %arg0, %c0_i32 : i32, i32
  }
}

</mosaic_0001>

<bundles_post_ra>
// kernel: encoder_forward.1
= control target key start
LH: loop header
LB: loop body
LE: loop exit
PB: predicated region body
PF: predicated region fallthrough
CT: control target
= control target key end

     0   :  { %v4965_v1 = vmov 0   ;;  %s6661_s1 = inlined_call_operand.vmem [shape: bf16[896,512], index: 1, kind: input, shape index: {}]   ;;  %s6662_s0 = inlined_call_operand.vmem [shape: bf16[128,896], index: 0, kind: input, shape index: {}]   ;;  %s6663_s3 = inlined_call_operand.vmem [shape: bf16[512,256], index: 3, kind: input, shape index: {}]   ;;  %s6664_s2 = inlined_call_operand.vmem [shape: f32[1,512], index: 2, kind: input, shape index: {}]   ;;  %s6665_s5 = inlined_call_operand.vmem [shape: bf16[256,128], index: 5, kind: input, shape index: {}]   ;;  %s6666_s4 = inlined_call_operand.vmem [shape: f32[1,256], index: 4, kind: input, shape index: {}]   ;;  %s6667_s6 = inlined_call_operand.vmem [shape: f32[1,128], index: 6, kind: input, shape index: {}]   ;;  %s6668_s7 = inlined_call_operand.vmem [shape: f32[128,128], index: 7, kind: output, shape index: {}]  }
   0x1   :  { %v4429_v0 = vld [vmem:[%s6661_s1 + $0x4] ss:$16 sps:$4 sm:$0xff]   ;;  %2116 = vmatprep.mubr.bf16.mxu1 %v4965_v1  ;;  %v4433_v3 = vld [vmem:[%s6661_s1] ss:$16 sps:$4 sm:$0xff]   ;;  %v4482_v34 = vld [vmem:[%s6661_s1 + $0xc] ss:$16 sps:$4 sm:$0xff]  }
   0x2   :  { %v4431_v2 = vld [vmem:[%s6661_s1 + $0x604] ss:$16 sps:$4 sm:$0xff]   ;;  %1745 = vmatprep.subr.bf16.mxu0 %v4429_v0  ;;  %v4434_v4 = vld [vmem:[%s6661_s1 + $0x600] ss:$16 sps:$4 sm:$0xff]   ;;  %v4480_v36 = vld [vmem:[%s6661_s1 + $0x8] ss:$16 sps:$4 sm:$0xff]  }
   0x3   :  { %2084 = vmatprep.subr.bf16.mxu1 %v4431_v2  ;;  %v4435_v5 = vld [vmem:[%s6661_s1 + $0x24] ss:$16 sps:$4 sm:$0xff]   ;;  %1746 = vmatpush1.bf16.msra.mxu0 %v4433_v3  ;;  %v4439_v7 = vld [vmem:[%s6661_s1 + $0x20] ss:$16 sps:$4 sm:$0xff]   ;;  %v4488_v39 = vld [vmem:[%s6661_s1 + $0x2c] ss:$16 sps:$4 sm:$0xff]  }
   0x4   :  { %2085 = vmatpush1.bf16.msra.mxu1 %v4434_v4  ;;  %v4437_v6 = vld [vmem:[%s6661_s1 + $0x624] ss:$16 sps:$4 sm:$0xff]   ;;  %1747 = vmatprep.subr.bf16.mxu0 %v4435_v5  ;;  %v4440_v8 = vld [vmem:[%s6661_s1 + $0x620] ss:$16 sps:$4 sm:$0xff]   ;;  %v4486_v40 = vld [vmem:[%s6661_s1 + $0x28] ss:$16 sps:$4 sm:$0xff]  }
   0x5   :  { %2086 = vmatprep.subr.bf16.mxu1 %v4437_v6  ;;  %v4441_v9 = vld [vmem:[%s6661_s1 + $0x44] ss:$16 sps:$4 sm:$0xff]   ;;  %v4445_v11 = vld [vmem:[%s6661_s1 + $0x40] ss:$16 sps:$4 sm:$0xff]   ;;  %v4495_v43 = vld [vmem:[%s6661_s1 + $0x4c] ss:$16 sps:$4 sm:$0xff]  }
   0x6   :  { %v4443_v10 = vld [vmem:[%s6661_s1 + $0x644] ss:$16 sps:$4 sm:$0xff]   ;;  %v4446_v12 = vld [vmem:[%s6661_s1 + $0x640] ss:$16 sps:$4 sm:$0xff]   ;;  %v4493_v45 = vld [vmem:[%s6661_s1 + $0x48] ss:$16 sps:$4 sm:$0xff]  }
   0x7   :  { %1748 = vmatpush1.bf16.msra.mxu0 %v4439_v7  ;;  %v4447_v13 = vld [vmem:[%s6661_s1 + $0x64] ss:$16 sps:$4 sm:$0xff]   ;;  %v4451_v15 = vld [vmem:[%s6661_s1 + $0x60] ss:$16 sps:$4 sm:$0xff]   ;;  %v4501_v48 = vld [vmem:[%s6661_s1 + $0x6c] ss:$16 sps:$4 sm:$0xff]  }
   0x8   :  { %2087 = vmatpush1.bf16.msra.mxu1 %v4440_v8  ;;  %1749 = vmatprep.subr.bf16.mxu0 %v4441_v9  ;;  %v4449_v14 = vld [vmem:[%s6661_s1 + $0x664] ss:$16 sps:$4 sm:$0xff]   ;;  %v4452_v16 = vld [vmem:[%s6661_s1 + $0x660] ss:$16 sps:$4 sm:$0xff]   ;;  %v4499_v49 = vld [vmem:[%s6661_s1 + $0x68] ss:$16 sps:$4 sm:$0xff]  }
   0x9   :  { %2088 = vmatprep.subr.bf16.mxu1 %v4443_v10  ;;  %v4453_v17 = vld [vmem:[%s6661_s1 + $0x84] ss:$16 sps:$4 sm:$0xff]   ;;  %v4457_v19 = vld [vmem:[%s6661_s1 + $0x80] ss:$16 sps:$4 sm:$0xff]   ;;  %v4508_v52 = vld [vmem:[%s6661_s1 + $0x8c] ss:$16 sps:$4 sm:$0xff]  }
   0xa   :  { %v4455_v18 = vld [vmem:[%s6661_s1 + $0x684] ss:$16 sps:$4 sm:$0xff]   ;;  %v4458_v20 = vld [vmem:[%s6661_s1 + $0x680] ss:$16 sps:$4 sm:$0xff]   ;;  %v4506_v54 = vld [vmem:[%s6661_s1 + $0x88] ss:$16 sps:$4 sm:$0xff]  }
   0xb   :  { %1750 = vmatpush1.bf16.msra.mxu0 %v4445_v11  ;;  %v4459_v21 = vld [vmem:[%s6661_s1 + $0xa4] ss:$16 sps:$4 sm:$0xff]   ;;  %v4463_v23 = vld [vmem:[%s6661_s1 + $0xa0] ss:$16 sps:$4 sm:$0xff]   ;;  %v4514_v58 = vld [vmem:[%s6661_s1 + $0xac] ss:$16 sps:$4 sm:$0xff]  }
   0xc   :  { %2089 = vmatpush1.bf16.msra.mxu1 %v4446_v12  ;;  %1751 = vmatprep.subr.bf16.mxu0 %v4447_v13  ;;  %v4461_v22 = vld [vmem:[%s6661_s1 + $0x6a4] ss:$16 sps:$4 sm:$0xff]   ;;  %v4464_v24 = vld [vmem:[%s6661_s1 + $0x6a0] ss:$16 sps:$4 sm:$0xff]   ;;  %v4512_v59 = vld [vmem:[%s6661_s1 + $0xa8] ss:$16 sps:$4 sm:$0xff]  }
   0xd   :  { %2090 = vmatprep.subr.bf16.mxu1 %v4449_v14  ;;  %v4465_v25 = vld [vmem:[%s6661_s1 + $0xc4] ss:$16 sps:$4 sm:$0xff]   ;;  %v4469_v27 = vld [vmem:[%s6661_s1 + $0xc0] ss:$16 sps:$4 sm:$0xff]   ;;  %v4521_v62 = vld [vmem:[%s6661_s1 + $0xcc] ss:$16 sps:$4 sm:$0xff]  }
   0xe   :  { %v4467_v26 = vld [vmem:[%s6661_s1 + $0x6c4] ss:$16 sps:$4 sm:$0xff]   ;;  %v4470_v28 = vld [vmem:[%s6661_s1 + $0x6c0] ss:$16 sps:$4 sm:$0xff]   ;;  %v4519_v0 = vld [vmem:[%s6661_s1 + $0xc8] ss:$16 sps:$4 sm:$0xff]  }
   0xf   :  { %1752 = vmatpush1.bf16.msra.mxu0 %v4451_v15  ;;  %v4471_v29 = vld [vmem:[%s6661_s1 + $0xe4] ss:$16 sps:$4 sm:$0xff]   ;;  %v4475_v31 = vld [vmem:[%s6661_s1 + $0xe0] ss:$16 sps:$4 sm:$0xff]   ;;  %v4527_v4 = vld [vmem:[%s6661_s1 + $0xec] ss:$16 sps:$4 sm:$0xff]  }
  0x10   :  { %2091 = vmatpush1.bf16.msra.mxu1 %v4452_v16  ;;  %1753 = vmatprep.subr.bf16.mxu0 %v4453_v17  ;;  %v4473_v30 = vld [vmem:[%s6661_s1 + $0x6e4] ss:$16 sps:$4 sm:$0xff]   ;;  %v4476_v32 = vld [vmem:[%s6661_s1 + $0x6e0] ss:$16 sps:$4 sm:$0xff]   ;;  %v4525_v5 = vld [vmem:[%s6661_s1 + $0xe8] ss:$16 sps:$4 sm:$0xff]  }
  0x11   :  { %2092 = vmatprep.subr.bf16.mxu1 %v4455_v18  ;;  %v4477_v33 = vld [vmem:[%s6661_s1 + $0x104] ss:$16 sps:$4 sm:$0xff]   ;;  %v4483_v37 = vld [vmem:[%s6661_s1 + $0x100] ss:$16 sps:$4 sm:$0xff]   ;;  %v4538_v9 = vld [vmem:[%s6661_s1 + $0x10c] ss:$16 sps:$4 sm:$0xff]  }
  0x12   :  { %v4479_v35 = vld [vmem:[%s6662_s0 + $0x18] ss:$28 sps:$4 sm:$0xff]   ;;  %v4489_v41 = vld [vmem:[%s6661_s1 + $0x120] ss:$16 sps:$4 sm:$0xff]   ;;  %v4505_v53 = vld [vmem:[%s6662_s0 + $0x88] ss:$28 sps:$4 sm:$0xff]  }
  0x13   :  { %1754 = vmatpush1.bf16.msra.mxu0 %v4457_v19  ;;  %v4484_v38 = vld [vmem:[%s6661_s1 + $0x124] ss:$16 sps:$4 sm:$0xff]   ;;  %v4492_v44 = vld [vmem:[%s6662_s0 + $0x50] ss:$28 sps:$4 sm:$0xff]   ;;  %v4518_v63 = vld [vmem:[%s6662_s0 + $0xc0] ss:$28 sps:$4 sm:$0xff]  }
  0x14   :  { %2093 = vmatpush1.bf16.msra.mxu1 %v4458_v20  ;;  %1755 = vmatprep.subr.bf16.mxu0 %v4459_v21  ;;  %v4490_v42 = vld [vmem:[%s6661_s1 + $0x144] ss:$16 sps:$4 sm:$0xff]   ;;  %v4496_v46 = vld [vmem:[%s6661_s1 + $0x140] ss:$16 sps:$4 sm:$0xff]   ;;  %v4536_v12 = vld [vmem:[%s6661_s1 + $0x108] ss:$16 sps:$4 sm:$0xff]  }
  0x15   :  { %2094 = vmatprep.subr.bf16.mxu1 %v4461_v22  ;;  %v4497_v47 = vld [vmem:[%s6661_s1 + $0x164] ss:$16 sps:$4 sm:$0xff]   ;;  %v4502_v50 = vld [vmem:[%s6661_s1 + $0x160] ss:$16 sps:$4 sm:$0xff]   ;;  %v4544_v14 = vld [vmem:[%s6661_s1 + $0x12c] ss:$16 sps:$4 sm:$0xff]  }
  0x16   :  { %v4503_v51 = vld [vmem:[%s6661_s1 + $0x184] ss:$16 sps:$4 sm:$0xff]   ;;  %v4509_v55 = vld [vmem:[%s6661_s1 + $0x180] ss:$16 sps:$4 sm:$0xff]   ;;  %v5250_v15 = vld [vmem:[%s6662_s0 + $0x3c] ss:$28 sps:$4 sm:$0xff]  }
  0x17   :  { %1756 = vmatpush1.bf16.msra.mxu0 %v4463_v23  ;;  %v5177_v56 = vld [vmem:[%s6662_s0 + $0x4] ss:$28 sps:$4 sm:$0xff]   ;;  %v4535_v11 = vld [vmem:[%s6662_s0 + $0xf8] ss:$28 sps:$4 sm:$0xff]   ;;  %v4554_v20 = vld [vmem:[%s6661_s1 + $0x14c] ss:$16 sps:$4 sm:$0xff]  }
  0x18   :  { %2095 = vmatpush1.bf16.msra.mxu1 %v4464_v24  ;;  %1757 = vmatprep.subr.bf16.mxu0 %v4465_v25  ;;  %v4510_v57 = vld [vmem:[%s6661_s1 + $0x1a4] ss:$16 sps:$4 sm:$0xff]   ;;  %v4515_v60 = vld [vmem:[%s6661_s1 + $0x1a0] ss:$16 sps:$4 sm:$0xff]   ;;  %v4542_v17 = vld [vmem:[%s6661_s1 + $0x128] ss:$16 sps:$4 sm:$0xff]  }
  0x19   :  { %2096 = vmatprep.subr.bf16.mxu1 %v4467_v26  ;;  %1777 = vmatprep.mubr.bf16.mxu0 %v5177_v56  ;;  %v4516_v61 = vld [vmem:[%s6661_s1 + $0x1c4] ss:$16 sps:$4 sm:$0xff]   ;;  %v4522_v2 = vld [vmem:[%s6661_s1 + $0x1c0] ss:$16 sps:$4 sm:$0xff]   ;;  %v4552_v23 = vld [vmem:[%s6661_s1 + $0x148] ss:$16 sps:$4 sm:$0xff]  }
  0x1a   :  { %v4523_v3 = vld [vmem:[%s6661_s1 + $0x1e4] ss:$16 sps:$4 sm:$0xff]   ;;  %v4528_v6 = vld [vmem:[%s6661_s1 + $0x1e0] ss:$16 sps:$4 sm:$0xff]   ;;  %v4560_v25 = vld [vmem:[%s6661_s1 + $0x16c] ss:$16 sps:$4 sm:$0xff]  }
  0x1b   :  { %1758 = vmatpush1.bf16.msra.mxu0 %v4469_v27  ;;  %v5223_v7 = vld [vmem:[%s6662_s0] ss:$28 sps:$4 sm:$0xff]   ;;  %v4534_v8 = vld [vmem:[%s6661_s1 + $0x204] ss:$16 sps:$4 sm:$0xff]   ;;  %v4551_v22 = vld [vmem:[%s6662_s0 + $0x130] ss:$28 sps:$4 sm:$0xff]  }
  0x1c   :  { %2097 = vmatpush1.bf16.msra.mxu1 %v4470_v28  ;;  %1759 = vmatprep.subr.bf16.mxu0 %v4471_v29  ;;  %v4532_v10 = vld [vmem:[%s6661_s1 + $0x200] ss:$16 sps:$4 sm:$0xff]   ;;  %v4541_v13 = vld [vmem:[%s6661_s1 + $0x224] ss:$16 sps:$4 sm:$0xff]   ;;  %v4558_v28 = vld [vmem:[%s6661_s1 + $0x168] ss:$16 sps:$4 sm:$0xff]  }
  0x1d   :  { %2098 = vmatprep.subr.bf16.mxu1 %v4473_v30  ;;  %v4539_v16 = vld [vmem:[%s6661_s1 + $0x220] ss:$16 sps:$4 sm:$0xff]   ;;  %v5262_v18 = vld [vmem:[%s6662_s0 + $0x38] ss:$28 sps:$4 sm:$0xff]   ;;  %v4570_v30 = vld [vmem:[%s6661_s1 + $0x18c] ss:$16 sps:$4 sm:$0xff]  }
  0x1e   :  { %v4550_v19 = vld [vmem:[%s6661_s1 + $0x244] ss:$16 sps:$4 sm:$0xff]   ;;  %v4548_v21 = vld [vmem:[%s6661_s1 + $0x240] ss:$16 sps:$4 sm:$0xff]  }
  0x1f   :  { %1760 = vmatpush1.bf16.msra.mxu0 %v4475_v31  ;;  %v4557_v24 = vld [vmem:[%s6661_s1 + $0x264] ss:$16 sps:$4 sm:$0xff]   ;;  %v4555_v27 = vld [vmem:[%s6661_s1 + $0x260] ss:$16 sps:$4 sm:$0xff]  }
  0x20   :  { %2099 = vmatpush1.bf16.msra.mxu1 %v4476_v32  ;;  %1761 = vmatprep.subr.bf16.mxu0 %v4477_v33  ;;  %v5290_v26 = vld [vmem:[%s6662_s0 + $0x74] ss:$28 sps:$4 sm:$0xff]   ;;  %v4567_v33 = vld [vmem:[%s6662_s0 + $0x168] ss:$28 sps:$4 sm:$0xff]  }
  0x21   :  { %2197 = vmatprep.subr.bf16.mxu1 %v4482_v34  ;;  %v4566_v29 = vld [vmem:[%s6661_s1 + $0x284] ss:$16 sps:$4 sm:$0xff]   ;;  %v5310_v31 = vld [vmem:[%s6662_s0 + $0x70] ss:$28 sps:$4 sm:$0xff]   ;;  %v4568_v34 = vld [vmem:[%s6661_s1 + $0x188] ss:$16 sps:$4 sm:$0xff]  }
  0x22   :  { %v4564_v32 = vld [vmem:[%s6661_s1 + $0x280] ss:$16 sps:$4 sm:$0xff]  }
  0x23   :  { %2117 = vmatmul.mubr.bf16.vlgmr.msra.gmra.mrb[0].mxu1 %v4479_v35  ;;  %1762 = vmatpush1.bf16.msra.mxu0 %v4483_v37  ;;  %v4573_v35 = vld [vmem:[%s6661_s1 + $0x2a4] ss:$16 sps:$4 sm:$0xff]   ;;  %v5330_v37 = vld [vmem:[%s6662_s0 + $0xac] ss:$28 sps:$4 sm:$0xff]  }
  0x24   :  { %2198 = vmatpush1.bf16.msra.mxu1 %v4480_v36  ;;  %1763 = vmatprep.subr.bf16.mxu0 %v4484_v38  ;;  %v4576_v36 = vld [vmem:[%s6661_s1 + $0x1ac] ss:$16 sps:$4 sm:$0xff]   ;;  %v4571_v38 = vld [vmem:[%s6661_s1 + $0x2a0] ss:$16 sps:$4 sm:$0xff]  }
  0x25   :  { %2199 = vmatprep.subr.bf16.mxu1 %v4488_v39  ;;  %2126 = vmatprep.mubr.bf16.mxu1 %v4965_v1  ;;  %v4574_v39 = vld [vmem:[%s6661_s1 + $0x1a8] ss:$16 sps:$4 sm:$0xff]  }
  0x27   :  { %1764 = vmatpush1.bf16.msra.mxu0 %v4489_v41  ;;  %v4586_v41 = vld [vmem:[%s6661_s1 + $0x1cc] ss:$16 sps:$4 sm:$0xff]  }
  0x28   :  { %2200 = vmatpush1.bf16.msra.mxu1 %v4486_v40  ;;  %1765 = vmatprep.subr.bf16.mxu0 %v4490_v42  ;;  %v4582_v40 = vld [vmem:[%s6661_s1 + $0x2c4] ss:$16 sps:$4 sm:$0xff]  }
  0x29   :  { %2201 = vmatprep.subr.bf16.mxu1 %v4495_v43  ;;  %v5350_v42 = vld [vmem:[%s6662_s0 + $0xa8] ss:$28 sps:$4 sm:$0xff]   ;;  %v4580_v43 = vld [vmem:[%s6661_s1 + $0x2c0] ss:$16 sps:$4 sm:$0xff]  }
  0x2b   :  { %2127 = vmatmul.mubr.bf16.gmra.mrb[4].mxu1 %v4492_v44  ;;  %1766 = vmatpush1.bf16.msra.mxu0 %v4496_v46  ;;  %v4583_v44 = vld [vmem:[%s6662_s0 + $0x1a0] ss:$28 sps:$4 sm:$0xff]   ;;  %v4589_v46 = vld [vmem:[%s6661_s1 + $0x2e4] ss:$16 sps:$4 sm:$0xff]  }
  0x2c   :  { %2202 = vmatpush1.bf16.msra.mxu1 %v4493_v45  ;;  %1767 = vmatprep.subr.bf16.mxu0 %v4497_v47  ;;  %v4584_v45 = vld [vmem:[%s6661_s1 + $0x1c8] ss:$16 sps:$4 sm:$0xff]   ;;  %v4592_v47 = vld [vmem:[%s6661_s1 + $0x1ec] ss:$16 sps:$4 sm:$0xff]  }
  0x2d   :  { %2203 = vmatprep.subr.bf16.mxu1 %v4501_v48  ;;  %2136 = vmatprep.mubr.bf16.mxu1 %v4965_v1  ;;  %v5370_v48 = vld [vmem:[%s6662_s0 + $0xe4] ss:$28 sps:$4 sm:$0xff]  }
  0x2f   :  { %1768 = vmatpush1.bf16.msra.mxu0 %v4502_v50  ;;  %v4590_v50 = vld [vmem:[%s6661_s1 + $0x1e8] ss:$16 sps:$4 sm:$0xff]  }
  0x30   :  { %2204 = vmatpush1.bf16.msra.mxu1 %v4499_v49  ;;  %1769 = vmatprep.subr.bf16.mxu0 %v4503_v51  ;;  %v4587_v49 = vld [vmem:[%s6661_s1 + $0x2e0] ss:$16 sps:$4 sm:$0xff]   ;;  %v4598_v51 = vld [vmem:[%s6661_s1 + $0x304] ss:$16 sps:$4 sm:$0xff]  }
  0x31   :  { %2205 = vmatprep.subr.bf16.mxu1 %v4508_v52  ;;  %v4601_v52 = vld [vmem:[%s6661_s1 + $0x20c] ss:$16 sps:$4 sm:$0xff]  }
  0x33   :  { %2137 = vmatmul.mubr.bf16.gmra.mrb[8].mxu1 %v4505_v53  ;;  %1770 = vmatpush1.bf16.msra.mxu0 %v4509_v55  ;;  %v5390_v53 = vld [vmem:[%s6662_s0 + $0xe0] ss:$28 sps:$4 sm:$0xff]   ;;  %v4599_v55 = vld [vmem:[%s6661_s1 + $0x208] ss:$16 sps:$4 sm:$0xff]  }
  0x34   :  { %2206 = vmatpush1.bf16.msra.mxu1 %v4506_v54  ;;  %1771 = vmatprep.subr.bf16.mxu0 %v4510_v57  ;;  %v4596_v54 = vld [vmem:[%s6661_s1 + $0x300] ss:$16 sps:$4 sm:$0xff]   ;;  %v4604_v57 = vld [vmem:[%s6661_s1 + $0x324] ss:$16 sps:$4 sm:$0xff]  }
  0x35   :  { %2207 = vmatprep.subr.bf16.mxu1 %v4514_v58  ;;  %2146 = vmatprep.mubr.bf16.mxu1 %v4965_v1  ;;  %v5407_v58 = vld [vmem:[%s6662_s0 + $0x11c] ss:$28 sps:$4 sm:$0xff]  }
  0x37   :  { %1772 = vmatpush1.bf16.msra.mxu0 %v4515_v60  ;;  %v4605_v60 = vld [vmem:[%s6661_s1 + $0x228] ss:$16 sps:$4 sm:$0xff]  }
  0x38   :  { %2208 = vmatpush1.bf16.msra.mxu1 %v4512_v59  ;;  %1773 = vmatprep.subr.bf16.mxu0 %v4516_v61  ;;  %v4602_v59 = vld [vmem:[%s6661_s1 + $0x320] ss:$16 sps:$4 sm:$0xff]   ;;  %v4613_v61 = vld [vmem:[%s6661_s1 + $0x344] ss:$16 sps:$4 sm:$0xff]  }
  0x39   :  { %2209 = vmatprep.subr.bf16.mxu1 %v4521_v62  ;;  %v4616_v62 = vld [vmem:[%s6661_s1 + $0x24c] ss:$16 sps:$4 sm:$0xff]  }
  0x3b   :  { %2147 = vmatmul.mubr.bf16.gmra.mrb[12].mxu1 %v4518_v63  ;;  %1774 = vmatpush1.bf16.msra.mxu0 %v4522_v2  ;;  %v5428_v63 = vld [vmem:[%s6662_s0 + $0x118] ss:$28 sps:$4 sm:$0xff]  }
  0x3c   :  { %2210 = vmatpush1.bf16.msra.mxu1 %v4519_v0  ;;  %1775 = vmatprep.subr.bf16.mxu0 %v4523_v3  ;;  %v4611_v0 = vld [vmem:[%s6661_s1 + $0x340] ss:$16 sps:$4 sm:$0xff]   ;;  %v4614_v2 = vld [vmem:[%s6661_s1 + $0x248] ss:$16 sps:$4 sm:$0xff]   ;;  %v4619_v3 = vld [vmem:[%s6661_s1 + $0x364] ss:$16 sps:$4 sm:$0xff]  }
  0x3d   :  { %2211 = vmatprep.subr.bf16.mxu1 %v4527_v4  ;;  %2156 = vmatprep.mubr.bf16.mxu1 %v4965_v1  ;;  %v4622_v4 = vld [vmem:[%s6661_s1 + $0x26c] ss:$16 sps:$4 sm:$0xff]  }
  0x3f   :  { %1776 = vmatpush1.bf16.msra.mxu0 %v4528_v6  ;;  %v4617_v6 = vld [vmem:[%s6661_s1 + $0x360] ss:$16 sps:$4 sm:$0xff]  }
  0x40   :  { %2212 = vmatpush1.bf16.msra.mxu1 %v4525_v5  ;;  %1858 = vmatprep.subr.bf16.mxu0 %v4534_v8  ;;  %v5445_v5 = vld [vmem:[%s6662_s0 + $0x154] ss:$28 sps:$4 sm:$0xff]  }
  0x41   :  { %2213 = vmatprep.subr.bf16.mxu1 %v4538_v9  ;;  %v4628_v8 = vld [vmem:[%s6661_s1 + $0x384] ss:$16 sps:$4 sm:$0xff]   ;;  %v4631_v9 = vld [vmem:[%s6661_s1 + $0x28c] ss:$16 sps:$4 sm:$0xff]  }
  0x42   :  { %1778 = vmatmul.mubr.bf16.vlgmr.msra.gmra.mrb[0].mxu0 %v5223_v7 }
  0x43   :  { %2157 = vmatmul.mubr.bf16.gmra.mrb[16].mxu1 %v4535_v11  ;;  %1859 = vmatpush1.bf16.msra.mxu0 %v4532_v10  ;;  %v5466_v10 = vld [vmem:[%s6662_s0 + $0x150] ss:$28 sps:$4 sm:$0xff]  }
  0x44   :  { %2214 = vmatpush1.bf16.msra.mxu1 %v4536_v12  ;;  %1860 = vmatprep.subr.bf16.mxu0 %v4541_v13  ;;  %v4626_v11 = vld [vmem:[%s6661_s1 + $0x380] ss:$16 sps:$4 sm:$0xff]   ;;  %v4629_v12 = vld [vmem:[%s6661_s1 + $0x288] ss:$16 sps:$4 sm:$0xff]   ;;  %v4634_v13 = vld [vmem:[%s6661_s1 + $0x3a4] ss:$16 sps:$4 sm:$0xff]  }
  0x45   :  { %2215 = vmatprep.subr.bf16.mxu1 %v4544_v14  ;;  %1787 = vmatprep.mubr.bf16.mxu0 %v5250_v15  ;;  %v4637_v14 = vld [vmem:[%s6661_s1 + $0x2ac] ss:$16 sps:$4 sm:$0xff]  }
  0x46   :  { %2166 = vmatprep.mubr.bf16.mxu1 %v4965_v1 }
  0x47   :  { %1861 = vmatpush1.bf16.msra.mxu0 %v4539_v16  ;;  %v4632_v16 = vld [vmem:[%s6661_s1 + $0x3a0] ss:$16 sps:$4 sm:$0xff]  }
  0x48   :  { %2216 = vmatpush1.bf16.msra.mxu1 %v4542_v17  ;;  %1862 = vmatprep.subr.bf16.mxu0 %v4550_v19  ;;  %v4635_v17 = vld [vmem:[%s6661_s1 + $0x2a8] ss:$16 sps:$4 sm:$0xff]   ;;  %v4646_v19 = vld [vmem:[%s6661_s1 + $0x2cc] ss:$16 sps:$4 sm:$0xff]  }
  0x49   :  { %2217 = vmatprep.subr.bf16.mxu1 %v4554_v20  ;;  %v5504_v20 = vld [vmem:[%s6662_s0 + $0x188] ss:$28 sps:$4 sm:$0xff]  }
  0x4a   :  { %1788 = vmatmul.mubr.bf16.gmra.mrb[4].mxu0 %v5262_v18 }
  0x4b   :  { %2167 = vmatmul.mubr.bf16.gmra.mrb[20].mxu1 %v4551_v22  ;;  %1863 = vmatpush1.bf16.msra.mxu0 %v4548_v21  ;;  %v4641_v21 = vld [vmem:[%s6661_s1 + $0x3c0] ss:$16 sps:$4 sm:$0xff]   ;;  %v4644_v22 = vld [vmem:[%s6661_s1 + $0x2c8] ss:$16 sps:$4 sm:$0xff]  }
  0x4c   :  { %2218 = vmatpush1.bf16.msra.mxu1 %v4552_v23  ;;  %1864 = vmatprep.subr.bf16.mxu0 %v4557_v24  ;;  %v4649_v23 = vld [vmem:[%s6661_s1 + $0x3e4] ss:$16 sps:$4 sm:$0xff]   ;;  %v4652_v24 = vld [vmem:[%s6661_s1 + $0x2ec] ss:$16 sps:$4 sm:$0xff]  }
  0x4d   :  { %2219 = vmatprep.subr.bf16.mxu1 %v4560_v25  ;;  %1797 = vmatprep.mubr.bf16.mxu0 %v5290_v26  ;;  %v5521_v25 = vld [vmem:[%s6662_s0 + $0xc] ss:$28 sps:$4 sm:$0xff]  }
  0x4e   :  { %2176 = vmatprep.mubr.bf16.mxu1 %v4965_v1 }
  0x4f   :  { %1865 = vmatpush1.bf16.msra.mxu0 %v4555_v27  ;;  %v4650_v27 = vld [vmem:[%s6661_s1 + $0x2e8] ss:$16 sps:$4 sm:$0xff]  }
  0x50   :  { %2220 = vmatpush1.bf16.msra.mxu1 %v4558_v28  ;;  %1866 = vmatprep.subr.bf16.mxu0 %v4566_v29  ;;  %v4658_v28 = vld [vmem:[%s6661_s1 + $0x404] ss:$16 sps:$4 sm:$0xff]   ;;  %v4661_v29 = vld [vmem:[%s6661_s1 + $0x30c] ss:$16 sps:$4 sm:$0xff]  }
  0x51   :  { %2221 = vmatprep.subr.bf16.mxu1 %v4570_v30  ;;  %v5540_v30 = vld [vmem:[%s6662_s0 + $0x8] ss:$28 sps:$4 sm:$0xff]  }
  0x52   :  { %1798 = vmatmul.mubr.bf16.gmra.mrb[8].mxu0 %v5310_v31 }
  0x53   :  { %2177 = vmatmul.mubr.bf16.gmra.mrb[24].mxu1 %v4567_v33  ;;  %1867 = vmatpush1.bf16.msra.mxu0 %v4564_v32  ;;  %v4659_v32 = vld [vmem:[%s6661_s1 + $0x308] ss:$16 sps:$4 sm:$0xff]   ;;  %v4664_v33 = vld [vmem:[%s6661_s1 + $0x424] ss:$16 sps:$4 sm:$0xff]  }
  0x54   :  { %2222 = vmatpush1.bf16.msra.mxu1 %v4568_v34  ;;  %1868 = vmatprep.subr.bf16.mxu0 %v4573_v35  ;;  %v4667_v34 = vld [vmem:[%s6661_s1 + $0x32c] ss:$16 sps:$4 sm:$0xff]   ;;  %v5559_v35 = vld [vmem:[%s6662_s0 + $0x44] ss:$28 sps:$4 sm:$0xff]  }
  0x55   :  { %2223 = vmatprep.subr.bf16.mxu1 %v4576_v36  ;;  %1807 = vmatprep.mubr.bf16.mxu0 %v5330_v37  ;;  %v4662_v36 = vld [vmem:[%s6661_s1 + $0x420] ss:$16 sps:$4 sm:$0xff]  }
  0x56   :  { %2186 = vmatprep.mubr.bf16.mxu1 %v4965_v1 }
  0x57   :  { %1869 = vmatpush1.bf16.msra.mxu0 %v4571_v38  ;;  %v4673_v38 = vld [vmem:[%s6661_s1 + $0x444] ss:$16 sps:$4 sm:$0xff]  }
  0x58   :  { %2224 = vmatpush1.bf16.msra.mxu1 %v4574_v39  ;;  %1870 = vmatprep.subr.bf16.mxu0 %v4582_v40  ;;  %v4676_v39 = vld [vmem:[%s6661_s1 + $0x34c] ss:$16 sps:$4 sm:$0xff]  }
  0x59   :  { %2225 = vmatprep.subr.bf16.mxu1 %v4586_v41  ;;  %v5580_v40 = vld [vmem:[%s6662_s0 + $0x40] ss:$28 sps:$4 sm:$0xff]  }
  0x5a   :  { %1808 = vmatmul.mubr.bf16.gmra.mrb[12].mxu0 %v5350_v42  ;;  %v4671_v41 = vld [vmem:[%s6661_s1 + $0x440] ss:$16 sps:$4 sm:$0xff]  }
  0x5b   :  { %2187 = vmatmul.mubr.bf16.gmra.mrb[28].mxu1 %v4583_v44  ;;  %1871 = vmatpush1.bf16.msra.mxu0 %v4580_v43  ;;  %v4679_v43 = vld [vmem:[%s6661_s1 + $0x464] ss:$16 sps:$4 sm:$0xff]   ;;  %v4682_v44 = vld [vmem:[%s6661_s1 + $0x36c] ss:$16 sps:$4 sm:$0xff]  }
  0x5c   :  { %2226 = vmatpush1.bf16.msra.mxu1 %v4584_v45  ;;  %1872 = vmatprep.subr.bf16.mxu0 %v4589_v46  ;;  %v5597_v45 = vld [vmem:[%s6662_s0 + $0x7c] ss:$28 sps:$4 sm:$0xff]   ;;  %v4677_v46 = vld [vmem:[%s6661_s1 + $0x460] ss:$16 sps:$4 sm:$0xff]  }
  0x5d   :  { %2227 = vmatprep.subr.bf16.mxu1 %v4592_v47  ;;  %1817 = vmatprep.mubr.bf16.mxu0 %v5370_v48  ;;  %v4680_v47 = vld [vmem:[%s6661_s1 + $0x368] ss:$16 sps:$4 sm:$0xff]  }
  0x5e   :  { %2229 = vmatprep.mubr.bf16.mxu1 %v5177_v56  ;;  %v4607_v56 = vld [vmem:[%s6661_s1 + $0x22c] ss:$16 sps:$4 sm:$0xff]  }
  0x5f   :  { %1873 = vmatpush1.bf16.msra.mxu0 %v4587_v49  ;;  %v4691_v49 = vld [vmem:[%s6661_s1 + $0x38c] ss:$16 sps:$4 sm:$0xff]  }
  0x60   :  { %2228 = vmatpush1.bf16.msra.mxu1 %v4590_v50  ;;  %1874 = vmatprep.subr.bf16.mxu0 %v4598_v51  ;;  %v5618_v50 = vld [vmem:[%s6662_s0 + $0x78] ss:$28 sps:$4 sm:$0xff]   ;;  %v4686_v51 = vld [vmem:[%s6661_s1 + $0x480] ss:$16 sps:$4 sm:$0xff]  }
  0x61   :  { %2310 = vmatprep.subr.bf16.mxu1 %v4601_v52  ;;  %v4689_v52 = vld [vmem:[%s6661_s1 + $0x388] ss:$16 sps:$4 sm:$0xff]  }
  0x62   :  { %1818 = vmatmul.mubr.bf16.gmra.mrb[16].mxu0 %v5390_v53 }
  0x63   :  { %2230 = vmatmul.mubr.bf16.vlgmr.msra.gmra.mrb[32].mxu1 %v5223_v7  ;;  %1875 = vmatpush1.bf16.msra.mxu0 %v4596_v54  ;;  %v4620_v7 = vld [vmem:[%s6661_s1 + $0x268] ss:$16 sps:$4 sm:$0xff]   ;;  %v4697_v54 = vld [vmem:[%s6661_s1 + $0x3ac] ss:$16 sps:$4 sm:$0xff]  }
  0x64   :  { %2311 = vmatpush1.bf16.msra.mxu1 %v4599_v55  ;;  %1876 = vmatprep.subr.bf16.mxu0 %v4604_v57  ;;  %v5635_v55 = vld [vmem:[%s6662_s0 + $0xb4] ss:$28 sps:$4 sm:$0xff]  }
  0x65   :  { %2312 = vmatprep.subr.bf16.mxu1 %v4607_v56  ;;  %1827 = vmatprep.mubr.bf16.mxu0 %v5407_v58  ;;  %v4692_v57 = vld [vmem:[%s6661_s1 + $0x4a0] ss:$16 sps:$4 sm:$0xff]   ;;  %v4695_v56 = vld [vmem:[%s6661_s1 + $0x3a8] ss:$16 sps:$4 sm:$0xff]  }
  0x66   :  { %2239 = vmatprep.mubr.bf16.mxu1 %v5250_v15  ;;  %v5483_v15 = vld [vmem:[%s6662_s0 + $0x18c] ss:$28 sps:$4 sm:$0xff]  }
  0x67   :  { %1877 = vmatpush1.bf16.msra.mxu0 %v4602_v59  ;;  %v4706_v59 = vld [vmem:[%s6661_s1 + $0x3cc] ss:$16 sps:$4 sm:$0xff]  }
  0x68   :  { %2313 = vmatpush1.bf16.msra.mxu1 %v4605_v60  ;;  %1878 = vmatprep.subr.bf16.mxu0 %v4613_v61  ;;  %v5656_v60 = vld [vmem:[%s6662_s0 + $0xb0] ss:$28 sps:$4 sm:$0xff]  }
  0x69   :  { %2314 = vmatprep.subr.bf16.mxu1 %v4616_v62  ;;  %v4701_v61 = vld [vmem:[%s6661_s1 + $0x4c0] ss:$16 sps:$4 sm:$0xff]   ;;  %v4704_v62 = vld [vmem:[%s6661_s1 + $0x3c8] ss:$16 sps:$4 sm:$0xff]  }
  0x6a   :  { %1828 = vmatmul.mubr.bf16.gmra.mrb[20].mxu0 %v5428_v63 }
  0x6b   :  { %2240 = vmatmul.mubr.bf16.gmra.mrb[36].mxu1 %v5262_v18  ;;  %1879 = vmatpush1.bf16.msra.mxu0 %v4611_v0  ;;  %v4643_v18 = vld [vmem:[%s6661_s1 + $0x3c4] ss:$16 sps:$4 sm:$0xff]   ;;  %v4712_v0 = vld [vmem:[%s6661_s1 + $0x3ec] ss:$16 sps:$4 sm:$0xff]  }
  0x6c   :  { %2315 = vmatpush1.bf16.msra.mxu1 %v4614_v2  ;;  %1880 = vmatprep.subr.bf16.mxu0 %v4619_v3  ;;  %v5673_v2 = vld [vmem:[%s6662_s0 + $0xec] ss:$28 sps:$4 sm:$0xff]   ;;  %v4707_v3 = vld [vmem:[%s6661_s1 + $0x4e0] ss:$16 sps:$4 sm:$0xff]  }
  0x6d   :  { %2316 = vmatprep.subr.bf16.mxu1 %v4622_v4  ;;  %1837 = vmatprep.mubr.bf16.mxu0 %v5445_v5  ;;  %v4710_v4 = vld [vmem:[%s6661_s1 + $0x3e8] ss:$16 sps:$4 sm:$0xff]  }
  0x6e   :  { %2249 = vmatprep.mubr.bf16.mxu1 %v5290_v26  ;;  %v4647_v26 = vld [vmem:[%s6661_s1 + $0x3e0] ss:$16 sps:$4 sm:$0xff]  }
  0x6f   :  { %1881 = vmatpush1.bf16.msra.mxu0 %v4617_v6  ;;  %v4721_v6 = vld [vmem:[%s6661_s1 + $0x40c] ss:$16 sps:$4 sm:$0xff]  }
  0x70   :  { %2317 = vmatpush1.bf16.msra.mxu1 %v4620_v7  ;;  %1882 = vmatprep.subr.bf16.mxu0 %v4628_v8  ;;  %v5694_v7 = vld [vmem:[%s6662_s0 + $0xe8] ss:$28 sps:$4 sm:$0xff]   ;;  %v4716_v8 = vld [vmem:[%s6661_s1 + $0x500] ss:$16 sps:$4 sm:$0xff]  }
  0x71   :  { %2318 = vmatprep.subr.bf16.mxu1 %v4631_v9  ;;  %v4719_v9 = vld [vmem:[%s6661_s1 + $0x408] ss:$16 sps:$4 sm:$0xff]  }
  0x72   :  { %1838 = vmatmul.mubr.bf16.gmra.mrb[24].mxu0 %v5466_v10 }
  0x73   :  { %2250 = vmatmul.mubr.bf16.gmra.mrb[40].mxu1 %v5310_v31  ;;  %1883 = vmatpush1.bf16.msra.mxu0 %v4626_v11  ;;  %v4656_v31 = vld [vmem:[%s6661_s1 + $0x400] ss:$16 sps:$4 sm:$0xff]   ;;  %v4727_v11 = vld [vmem:[%s6661_s1 + $0x42c] ss:$16 sps:$4 sm:$0xff]  }
  0x74   :  { %2319 = vmatpush1.bf16.msra.mxu1 %v4629_v12  ;;  %1884 = vmatprep.subr.bf16.mxu0 %v4634_v13  ;;  %v5711_v12 = vld [vmem:[%s6662_s0 + $0x124] ss:$28 sps:$4 sm:$0xff]  }
  0x75   :  { %2320 = vmatprep.subr.bf16.mxu1 %v4637_v14  ;;  %1847 = vmatprep.mubr.bf16.mxu0 %v5483_v15  ;;  %v4722_v13 = vld [vmem:[%s6661_s1 + $0x520] ss:$16 sps:$4 sm:$0xff]   ;;  %v4725_v14 = vld [vmem:[%s6661_s1 + $0x428] ss:$16 sps:$4 sm:$0xff]  }
  0x76   :  { %2259 = vmatprep.mubr.bf16.mxu1 %v5330_v37  ;;  %v4665_v37 = vld [vmem:[%s6661_s1 + $0x328] ss:$16 sps:$4 sm:$0xff]  }
  0x77   :  { %1885 = vmatpush1.bf16.msra.mxu0 %v4632_v16  ;;  %v4736_v16 = vld [vmem:[%s6661_s1 + $0x44c] ss:$16 sps:$4 sm:$0xff]  }
  0x78   :  { %2321 = vmatpush1.bf16.msra.mxu1 %v4635_v17  ;;  %1886 = vmatprep.subr.bf16.mxu0 %v4643_v18  ;;  %v5732_v17 = vld [vmem:[%s6662_s0 + $0x120] ss:$28 sps:$4 sm:$0xff]  }
  0x79   :  { %2322 = vmatprep.subr.bf16.mxu1 %v4646_v19  ;;  %v4731_v18 = vld [vmem:[%s6661_s1 + $0x540] ss:$16 sps:$4 sm:$0xff]   ;;  %v4734_v19 = vld [vmem:[%s6661_s1 + $0x448] ss:$16 sps:$4 sm:$0xff]  }
  0x7a   :  { %1848 = vmatmul.mubr.bf16.gmra.mrb[28].mxu0 %v5504_v20 }
  0x7b   :  { %2260 = vmatmul.mubr.bf16.gmra.mrb[44].mxu1 %v5350_v42  ;;  %1887 = vmatpush1.bf16.msra.mxu0 %v4641_v21  ;;  %v4674_v42 = vld [vmem:[%s6661_s1 + $0x348] ss:$16 sps:$4 sm:$0xff]   ;;  %v4742_v21 = vld [vmem:[%s6661_s1 + $0x46c] ss:$16 sps:$4 sm:$0xff]  }
  0x7c   :  { %2323 = vmatpush1.bf16.msra.mxu1 %v4644_v22  ;;  %1888 = vmatprep.subr.bf16.mxu0 %v4649_v23  ;;  %v5749_v22 = vld [vmem:[%s6662_s0 + $0x15c] ss:$28 sps:$4 sm:$0xff]   ;;  %v4737_v23 = vld [vmem:[%s6661_s1 + $0x560] ss:$16 sps:$4 sm:$0xff]  }
  0x7d   :  { %2324 = vmatprep.subr.bf16.mxu1 %v4652_v24  ;;  %1890 = vmatprep.mubr.bf16.mxu0 %v5521_v25  ;;  %v4740_v24 = vld [vmem:[%s6661_s1 + $0x468] ss:$16 sps:$4 sm:$0xff]  }
  0x7e   :  { %2269 = vmatprep.mubr.bf16.mxu1 %v5370_v48  ;;  %v4688_v48 = vld [vmem:[%s6661_s1 + $0x484] ss:$16 sps:$4 sm:$0xff]  }
  0x7f   :  { %1889 = vmatpush1.bf16.msra.mxu0 %v4647_v26  ;;  %v4751_v26 = vld [vmem:[%s6661_s1 + $0x48c] ss:$16 sps:$4 sm:$0xff]  }
  0x80   :  { %2325 = vmatpush1.bf16.msra.mxu1 %v4650_v27  ;;  %1971 = vmatprep.subr.bf16.mxu0 %v4658_v28  ;;  %v5770_v27 = vld [vmem:[%s6662_s0 + $0x158] ss:$28 sps:$4 sm:$0xff]   ;;  %v4746_v28 = vld [vmem:[%s6661_s1 + $0x580] ss:$16 sps:$4 sm:$0xff]  }
  0x81   :  { %2326 = vmatprep.subr.bf16.mxu1 %v4661_v29  ;;  %v4749_v29 = vld [vmem:[%s6661_s1 + $0x488] ss:$16 sps:$4 sm:$0xff]  }
  0x82   :  { %1891 = vmatmul.mubr.bf16.vlgmr.msra.gmra.mrb[0].mxu0 %v5540_v30 }
  0x83   :  { %2270 = vmatmul.mubr.bf16.gmra.mrb[48].mxu1 %v5390_v53  ;;  %1972 = vmatpush1.bf16.msra.mxu0 %v4656_v31  ;;  %v4694_v53 = vld [vmem:[%s6661_s1 + $0x4a4] ss:$16 sps:$4 sm:$0xff]   ;;  %v4757_v31 = vld [vmem:[%s6661_s1 + $0x4ac] ss:$16 sps:$4 sm:$0xff]  }
  0x84   :  { %2327 = vmatpush1.bf16.msra.mxu1 %v4659_v32  ;;  %1973 = vmatprep.subr.bf16.mxu0 %v4664_v33  ;;  %v5787_v32 = vld [vmem:[%s6662_s0 + $0x194] ss:$28 sps:$4 sm:$0xff]  }
  0x85   :  { %2328 = vmatprep.subr.bf16.mxu1 %v4667_v34  ;;  %1900 = vmatprep.mubr.bf16.mxu0 %v5559_v35  ;;  %v4752_v33 = vld [vmem:[%s6661_s1 + $0x5a0] ss:$16 sps:$4 sm:$0xff]   ;;  %v4755_v34 = vld [vmem:[%s6661_s1 + $0x4a8] ss:$16 sps:$4 sm:$0xff]  }
  0x86   :  { %2279 = vmatprep.mubr.bf16.mxu1 %v5407_v58  ;;  %v4703_v58 = vld [vmem:[%s6661_s1 + $0x4c4] ss:$16 sps:$4 sm:$0xff]  }
  0x87   :  { %1974 = vmatpush1.bf16.msra.mxu0 %v4662_v36  ;;  %v4766_v36 = vld [vmem:[%s6661_s1 + $0x4cc] ss:$16 sps:$4 sm:$0xff]  }
  0x88   :  { %2329 = vmatpush1.bf16.msra.mxu1 %v4665_v37  ;;  %1975 = vmatprep.subr.bf16.mxu0 %v4673_v38  ;;  %v5808_v37 = vld [vmem:[%s6662_s0 + $0x190] ss:$28 sps:$4 sm:$0xff]  }
  0x89   :  { %2330 = vmatprep.subr.bf16.mxu1 %v4676_v39  ;;  %v4761_v38 = vld [vmem:[%s6661_s1 + $0x5c0] ss:$16 sps:$4 sm:$0xff]   ;;  %v4764_v39 = vld [vmem:[%s6661_s1 + $0x4c8] ss:$16 sps:$4 sm:$0xff]  }
  0x8a   :  { %1901 = vmatmul.mubr.bf16.gmra.mrb[4].mxu0 %v5580_v40 }
  0x8b   :  { %2280 = vmatmul.mubr.bf16.gmra.mrb[52].mxu1 %v5428_v63  ;;  %1976 = vmatpush1.bf16.msra.mxu0 %v4671_v41  ;;  %v4709_v63 = vld [vmem:[%s6661_s1 + $0x4e4] ss:$16 sps:$4 sm:$0xff]   ;;  %v4772_v41 = vld [vmem:[%s6661_s1 + $0x4ec] ss:$16 sps:$4 sm:$0xff]  }
  0x8c   :  { %2331 = vmatpush1.bf16.msra.mxu1 %v4674_v42  ;;  %1977 = vmatprep.subr.bf16.mxu0 %v4679_v43  ;;  %v5825_v42 = vld [vmem:[%s6662_s0 + $0x14] ss:$28 sps:$4 sm:$0xff]  }
  0x8d   :  { %2332 = vmatprep.subr.bf16.mxu1 %v4682_v44  ;;  %1910 = vmatprep.mubr.bf16.mxu0 %v5597_v45  ;;  %v4767_v43 = vld [vmem:[%s6661_s1 + $0x5e0] ss:$16 sps:$4 sm:$0xff]   ;;  %v4770_v44 = vld [vmem:[%s6661_s1 + $0x4e8] ss:$16 sps:$4 sm:$0xff]  }
  0x8e   :  { %2289 = vmatprep.mubr.bf16.mxu1 %v5445_v5  ;;  %v4718_v5 = vld [vmem:[%s6661_s1 + $0x504] ss:$16 sps:$4 sm:$0xff]  }
  0x8f   :  { %1978 = vmatpush1.bf16.msra.mxu0 %v4677_v46  ;;  %v5843_v46 = vld [vmem:[%s6662_s0 + $0x10] ss:$28 sps:$4 sm:$0xff]  }
  0x90   :  { %2333 = vmatpush1.bf16.msra.mxu1 %v4680_v47  ;;  %1979 = vmatprep.subr.bf16.mxu0 %v4688_v48  ;;  %v4776_v47 = vld [vmem:[%s6661_s1 + $0x508] ss:$16 sps:$4 sm:$0xff]  }
  0x91   :  { %2334 = vmatprep.subr.bf16.mxu1 %v4691_v49  ;;  %v5851_v48 = vld [vmem:[%s6662_s0 + $0x4c] ss:$28 sps:$4 sm:$0xff]  }
  0x92   :  { %1911 = vmatmul.mubr.bf16.gmra.mrb[8].mxu0 %v5618_v50  ;;  %v4781_v49 = vld [vmem:[%s6661_s1 + $0x52c] ss:$16 sps:$4 sm:$0xff]  }
  0x93   :  { %2290 = vmatmul.mubr.bf16.gmra.mrb[56].mxu1 %v5466_v10  ;;  %1980 = vmatpush1.bf16.msra.mxu0 %v4686_v51  ;;  %v4724_v10 = vld [vmem:[%s6661_s1 + $0x524] ss:$16 sps:$4 sm:$0xff]   ;;  %v4787_v51 = vld [vmem:[%s6661_s1 + $0x54c] ss:$16 sps:$4 sm:$0xff]  }
  0x94   :  { %2335 = vmatpush1.bf16.msra.mxu1 %v4689_v52  ;;  %1981 = vmatprep.subr.bf16.mxu0 %v4694_v53  ;;  %v5869_v52 = vld [vmem:[%s6662_s0 + $0x48] ss:$28 sps:$4 sm:$0xff]  }
  0x95   :  { %2336 = vmatprep.subr.bf16.mxu1 %v4697_v54  ;;  %1920 = vmatprep.mubr.bf16.mxu0 %v5635_v55  ;;  %v4785_v53 = vld [vmem:[%s6661_s1 + $0x548] ss:$16 sps:$4 sm:$0xff]   ;;  %v5877_v54 = vld [vmem:[%s6662_s0 + $0x84] ss:$28 sps:$4 sm:$0xff]  }
  0x96   :  { %2299 = vmatprep.mubr.bf16.mxu1 %v5483_v15  ;;  %v4733_v15 = vld [vmem:[%s6661_s1 + $0x544] ss:$16 sps:$4 sm:$0xff]  }
  0x97   :  { %1982 = vmatpush1.bf16.msra.mxu0 %v4692_v57  ;;  %v4788_v57 = vld [vmem:[%s6661_s1 + $0x568] ss:$16 sps:$4 sm:$0xff]  }
  0x98   :  { %2337 = vmatpush1.bf16.msra.mxu1 %v4695_v56  ;;  %1983 = vmatprep.subr.bf16.mxu0 %v4703_v58  ;;  %v4796_v56 = vld [vmem:[%s6661_s1 + $0x58c] ss:$16 sps:$4 sm:$0xff]  }
  0x99   :  { %2338 = vmatprep.subr.bf16.mxu1 %v4706_v59  ;;  %v5895_v58 = vld [vmem:[%s6662_s0 + $0x80] ss:$28 sps:$4 sm:$0xff]   ;;  %v4794_v59 = vld [vmem:[%s6661_s1 + $0x588] ss:$16 sps:$4 sm:$0xff]  }
  0x9a   :  { %1921 = vmatmul.mubr.bf16.gmra.mrb[12].mxu0 %v5656_v60 }
  0x9b   :  { %2300 = vmatmul.mubr.bf16.gmra.mrb[60].mxu1 %v5504_v20  ;;  %1984 = vmatpush1.bf16.msra.mxu0 %v4701_v61  ;;  %v4739_v20 = vld [vmem:[%s6661_s1 + $0x564] ss:$16 sps:$4 sm:$0xff]   ;;  %v4799_v61 = vld [vmem:[%s6661_s1 + $0x5ac] ss:$16 sps:$4 sm:$0xff]  }
  0x9c   :  { %2339 = vmatpush1.bf16.msra.mxu1 %v4704_v62  ;;  %1985 = vmatprep.subr.bf16.mxu0 %v4709_v63  ;;  %v4797_v62 = vld [vmem:[%s6661_s1 + $0x5a8] ss:$16 sps:$4 sm:$0xff]   ;;  %v4805_v63 = vld [vmem:[%s6661_s1 + $0x5cc] ss:$16 sps:$4 sm:$0xff]  }
  0x9d   :  { %2340 = vmatprep.subr.bf16.mxu1 %v4712_v0  ;;  %1930 = vmatprep.mubr.bf16.mxu0 %v5673_v2  ;;  %v5921_v0 = vld [vmem:[%s6662_s0 + $0xb8] ss:$28 sps:$4 sm:$0xff]  }
  0x9e   :  { %2342 = vmatprep.mubr.bf16.mxu1 %v5521_v25  ;;  %v4748_v25 = vld [vmem:[%s6661_s1 + $0x584] ss:$16 sps:$4 sm:$0xff]  }
  0x9f   :  { %1986 = vmatpush1.bf16.msra.mxu0 %v4707_v3  ;;  %v5929_v3 = vld [vmem:[%s6662_s0 + $0xf4] ss:$28 sps:$4 sm:$0xff]  }
  0xa0   :  { %2341 = vmatpush1.bf16.msra.mxu1 %v4710_v4  ;;  %1987 = vmatprep.subr.bf16.mxu0 %v4718_v5  ;;  %v4808_v4 = vld [vmem:[%s6661_s1 + $0x5ec] ss:$16 sps:$4 sm:$0xff]   ;;  %v4806_v5 = vld [vmem:[%s6661_s1 + $0x5e8] ss:$16 sps:$4 sm:$0xff]  }
  0xa1   :  { %2423 = vmatprep.subr.bf16.mxu1 %v4721_v6  ;;  %v4814_v6 = vld [vmem:[%s6661_s1 + $0x60c] ss:$16 sps:$4 sm:$0xff]  }
  0xa2   :  { %1931 = vmatmul.mubr.bf16.gmra.mrb[16].mxu0 %v5694_v7 }
  0xa3   :  { %2343 = vmatmul.mubr.bf16.vlgmr.msra.gmra.mrb[32].mxu1 %v5540_v30  ;;  %1988 = vmatpush1.bf16.msra.mxu0 %v4716_v8  ;;  %v4754_v30 = vld [vmem:[%s6661_s1 + $0x5a4] ss:$16 sps:$4 sm:$0xff]  }
  0xa4   :  { %2424 = vmatpush1.bf16.msra.mxu1 %v4719_v9  ;;  %1989 = vmatprep.subr.bf16.mxu0 %v4724_v10  ;;  %v4847_v8 = vld [vmem:[%s6663_s3 + $0x4] ss:$8 sps:$4 sm:$0xff]   ;;  %v4850_v9 = vld [vmem:[%s6663_s3 + $0x14] ss:$8 sps:$4 sm:$0xff]  }
  0xa5   :  { %2425 = vmatprep.subr.bf16.mxu1 %v4727_v11  ;;  %1940 = vmatprep.mubr.bf16.mxu0 %v5711_v12  ;;  %v5956_v10 = vld [vmem:[%s6662_s0 + $0xf0] ss:$28 sps:$4 sm:$0xff]   ;;  %v4812_v11 = vld [vmem:[%s6661_s1 + $0x608] ss:$16 sps:$4 sm:$0xff]  }
  0xa6   :  { %2352 = vmatprep.mubr.bf16.mxu1 %v5559_v35  ;;  %v4763_v35 = vld [vmem:[%s6661_s1 + $0x5c4] ss:$16 sps:$4 sm:$0xff]  }
  0xa7   :  { %1990 = vmatpush1.bf16.msra.mxu0 %v4722_v13  ;;  %v4820_v13 = vld [vmem:[%s6661_s1 + $0x62c] ss:$16 sps:$4 sm:$0xff]  }
  0xa8   :  { %2426 = vmatpush1.bf16.msra.mxu1 %v4725_v14  ;;  %1991 = vmatprep.subr.bf16.mxu0 %v4733_v15  ;;  %v4848_v14 = vld [vmem:[%s6663_s3 + $0x10] ss:$8 sps:$4 sm:$0xff]   ;;  %v4853_v15 = vld [vmem:[%s6663_s3 + $0x24] ss:$8 sps:$4 sm:$0xff]  }
  0xa9   :  { %2427 = vmatprep.subr.bf16.mxu1 %v4736_v16  ;;  %v4818_v16 = vld [vmem:[%s6661_s1 + $0x628] ss:$16 sps:$4 sm:$0xff]  }
  0xaa   :  { %1941 = vmatmul.mubr.bf16.gmra.mrb[20].mxu0 %v5732_v17 }
  0xab   :  { %2353 = vmatmul.mubr.bf16.gmra.mrb[36].mxu1 %v5580_v40  ;;  %1992 = vmatpush1.bf16.msra.mxu0 %v4731_v18  ;;  %v4769_v40 = vld [vmem:[%s6661_s1 + $0x5e4] ss:$16 sps:$4 sm:$0xff]   ;;  %v4851_v18 = vld [vmem:[%s6663_s3 + $0x20] ss:$8 sps:$4 sm:$0xff]  }
  0xac   :  { %2428 = vmatpush1.bf16.msra.mxu1 %v4734_v19  ;;  %1993 = vmatprep.subr.bf16.mxu0 %v4739_v20  ;;  %v5991_v19 = vld [vmem:[%s6662_s0 + $0x128] ss:$28 sps:$4 sm:$0xff]  }
  0xad   :  { %2429 = vmatprep.subr.bf16.mxu1 %v4742_v21  ;;  %1950 = vmatprep.mubr.bf16.mxu0 %v5749_v22  ;;  %v5996_v20 = vld [vmem:[%s6662_s0 + $0x164] ss:$28 sps:$4 sm:$0xff]   ;;  %v4824_v21 = vld [vmem:[%s6661_s1 + $0x648] ss:$16 sps:$4 sm:$0xff]  }
  0xae   :  { %2362 = vmatprep.mubr.bf16.mxu1 %v5597_v45  ;;  %v4778_v45 = vld [vmem:[%s6661_s1 + $0x50c] ss:$16 sps:$4 sm:$0xff]  }
  0xaf   :  { %1994 = vmatpush1.bf16.msra.mxu0 %v4737_v23  ;;  %v4832_v23 = vld [vmem:[%s6661_s1 + $0x66c] ss:$16 sps:$4 sm:$0xff]  }
  0xb0   :  { %2430 = vmatpush1.bf16.msra.mxu1 %v4740_v24  ;;  %1995 = vmatprep.subr.bf16.mxu0 %v4748_v25  ;;  %v4854_v24 = vld [vmem:[%s6663_s3 + $0x30] ss:$8 sps:$4 sm:$0xff]   ;;  %v4859_v25 = vld [vmem:[%s6663_s3 + $0x44] ss:$8 sps:$4 sm:$0xff]  }
  0xb1   :  { %2431 = vmatprep.subr.bf16.mxu1 %v4751_v26  ;;  %v4830_v26 = vld [vmem:[%s6661_s1 + $0x668] ss:$16 sps:$4 sm:$0xff]  }
  0xb2   :  { %1951 = vmatmul.mubr.bf16.gmra.mrb[24].mxu0 %v5770_v27 }
  0xb3   :  { %2363 = vmatmul.mubr.bf16.gmra.mrb[40].mxu1 %v5618_v50  ;;  %1996 = vmatpush1.bf16.msra.mxu0 %v4746_v28  ;;  %v4779_v50 = vld [vmem:[%s6661_s1 + $0x528] ss:$16 sps:$4 sm:$0xff]   ;;  %v4835_v28 = vld [vmem:[%s6661_s1 + $0x68c] ss:$16 sps:$4 sm:$0xff]  }
  0xb4   :  { %2432 = vmatpush1.bf16.msra.mxu1 %v4749_v29  ;;  %1997 = vmatprep.subr.bf16.mxu0 %v4754_v30  ;;  %v4857_v29 = vld [vmem:[%s6663_s3 + $0x40] ss:$8 sps:$4 sm:$0xff]   ;;  %v6034_v30 = vld [vmem:[%s6662_s0 + $0x19c] ss:$28 sps:$4 sm:$0xff]  }
  0xb5   :  { %2433 = vmatprep.subr.bf16.mxu1 %v4757_v31  ;;  %1960 = vmatprep.mubr.bf16.mxu0 %v5787_v32  ;;  %v4833_v31 = vld [vmem:[%s6661_s1 + $0x688] ss:$16 sps:$4 sm:$0xff]  }
  0xb6   :  { %2372 = vmatprep.mubr.bf16.mxu1 %v5635_v55  ;;  %v4790_v55 = vld [vmem:[%s6661_s1 + $0x56c] ss:$16 sps:$4 sm:$0xff]  }
  0xb7   :  { %1998 = vmatpush1.bf16.msra.mxu0 %v4752_v33  ;;  %v4838_v33 = vld [vmem:[%s6661_s1 + $0x6ac] ss:$16 sps:$4 sm:$0xff]  }
  0xb8   :  { %2434 = vmatpush1.bf16.msra.mxu1 %v4755_v34  ;;  %1999 = vmatprep.subr.bf16.mxu0 %v4763_v35  ;;  %v4860_v34 = vld [vmem:[%s6663_s3 + $0x50] ss:$8 sps:$4 sm:$0xff]   ;;  %v4865_v35 = vld [vmem:[%s6663_s3 + $0x64] ss:$8 sps:$4 sm:$0xff]  }
  0xb9   :  { %2435 = vmatprep.subr.bf16.mxu1 %v4766_v36  ;;  %v4836_v36 = vld [vmem:[%s6661_s1 + $0x6a8] ss:$16 sps:$4 sm:$0xff]  }
  0xba   :  { %1961 = vmatmul.mubr.bf16.gmra.mrb[28].mxu0 %v5808_v37 }
  0xbb   :  { %2373 = vmatmul.mubr.bf16.gmra.mrb[44].mxu1 %v5656_v60  ;;  %2000 = vmatpush1.bf16.msra.mxu0 %v4761_v38  ;;  %v5903_v60 = vld [vmem:[%s6662_s0 + $0xbc] ss:$28 sps:$4 sm:$0xff]   ;;  %v4863_v38 = vld [vmem:[%s6663_s3 + $0x60] ss:$8 sps:$4 sm:$0xff]  }
  0xbc   :  { %2436 = vmatpush1.bf16.msra.mxu1 %v4764_v39  ;;  %2001 = vmatprep.subr.bf16.mxu0 %v4769_v40  ;;  %v6067_v39 = vld [vmem:[%s6662_s0 + $0x198] ss:$28 sps:$4 sm:$0xff]  }
  0xbd   :  { %2437 = vmatprep.subr.bf16.mxu1 %v4772_v41  ;;  %2003 = vmatprep.mubr.bf16.mxu0 %v5825_v42  ;;  %v4868_v41 = vld [vmem:[%s6663_s3 + $0x74] ss:$8 sps:$4 sm:$0xff]  }
  0xbe   :  { %2382 = vmatprep.mubr.bf16.mxu1 %v5673_v2  ;;  %v4803_v2 = vld [vmem:[%s6661_s1 + $0x5c8] ss:$16 sps:$4 sm:$0xff]  }
  0xbf   :  { %2002 = vmatpush1.bf16.msra.mxu0 %v4767_v43  ;;  %v4839_v43 = vld [vmem:[%s6661_s1 + $0x6c8] ss:$16 sps:$4 sm:$0xff]  }
  0xc0   :  { %2438 = vmatpush1.bf16.msra.mxu1 %v4770_v44  ;;  %3141 = vmatprep.subr.bf16.mxu0 %v4847_v8  ;;  %v4886_v8 = vld [vmem:[%s6663_s3 + $0xd4] ss:$8 sps:$4 sm:$0xff]  }
  0xc1   :  { %2439 = vmatprep.subr.bf16.mxu1 %v4778_v45 }
  0xc2   :  { %2004 = vmatmul.mubr.bf16.vlgmr.msra.gmra.mrb[0].mxu0 %v5843_v46 }
  0xc3   :  { %2383 = vmatmul.mubr.bf16.gmra.mrb[48].mxu1 %v5694_v7  ;;  %2013 = vmatprep.mubr.bf16.mxu0 %v5851_v48  ;;  %v4845_v7 = vld [vmem:[%s6663_s3] ss:$8 sps:$4 sm:$0xff]  }
  0xc4   :  { %2440 = vmatpush1.bf16.msra.mxu1 %v4776_v47  ;;  %2392 = vmatprep.mubr.bf16.mxu1 %v5711_v12  ;;  %v5964_v12 = vld [vmem:[%s6662_s0 + $0x12c] ss:$28 sps:$4 sm:$0xff]   ;;  %v4866_v47 = vld [vmem:[%s6663_s3 + $0x70] ss:$8 sps:$4 sm:$0xff]  }
  0xc5   :  { %2441 = vmatprep.subr.bf16.mxu1 %v4781_v49  ;;  %3142 = vmatpush1.bf16.msra.mxu0 %v4845_v7  ;;  %v4842_v49 = vld [vmem:[%s6661_s1 + $0x6e8] ss:$16 sps:$4 sm:$0xff]  }
  0xc6   :  { %3143 = vmatprep.subr.bf16.mxu0 %v4850_v9 }
  0xc8   :  { %2442 = vmatpush1.bf16.msra.mxu1 %v4779_v50 }
  0xc9   :  { %2443 = vmatprep.subr.bf16.mxu1 %v4787_v51  ;;  %3144 = vmatpush1.bf16.msra.mxu0 %v4848_v14  ;;  %v4869_v51 = vld [vmem:[%s6663_s3 + $0x80] ss:$8 sps:$4 sm:$0xff]   ;;  %v4889_v14 = vld [vmem:[%s6663_s3 + $0xe4] ss:$8 sps:$4 sm:$0xff]  }
  0xca   :  { %2014 = vmatmul.mubr.bf16.gmra.mrb[4].mxu0 %v5869_v52  ;;  %3145 = vmatprep.subr.bf16.mxu0 %v4853_v15  ;;  %v4887_v15 = vld [vmem:[%s6663_s3 + $0xe0] ss:$8 sps:$4 sm:$0xff]  }
  0xcb   :  { %2393 = vmatmul.mubr.bf16.gmra.mrb[52].mxu1 %v5732_v17  ;;  %2023 = vmatprep.mubr.bf16.mxu0 %v5877_v54  ;;  %v4826_v17 = vld [vmem:[%s6661_s1 + $0x64c] ss:$16 sps:$4 sm:$0xff]  }
  0xcc   :  { %2444 = vmatpush1.bf16.msra.mxu1 %v4785_v53  ;;  %2402 = vmatprep.mubr.bf16.mxu1 %v5749_v22  ;;  %v4856_v22 = vld [vmem:[%s6663_s3 + $0x34] ss:$8 sps:$4 sm:$0xff]  }
  0xcd   :  { %2445 = vmatprep.subr.bf16.mxu1 %v4790_v55  ;;  %3146 = vmatpush1.bf16.msra.mxu0 %v4851_v18  ;;  %v4874_v53 = vld [vmem:[%s6663_s3 + $0x94] ss:$8 sps:$4 sm:$0xff]   ;;  %v4890_v18 = vld [vmem:[%s6663_s3 + $0xf0] ss:$8 sps:$4 sm:$0xff]  }
  0xce   :  { %3147 = vmatprep.subr.bf16.mxu0 %v4856_v22  ;;  %v4957_v22 = vld [vmem:[%s6662_s0 + $0x18] ss:$28 sps:$4 sm:$0xff]  }
  0xd0   :  { %2446 = vmatpush1.bf16.msra.mxu1 %v4788_v57  ;;  %v4872_v57 = vld [vmem:[%s6663_s3 + $0x90] ss:$8 sps:$4 sm:$0xff]  }
  0xd1   :  { %2447 = vmatprep.subr.bf16.mxu1 %v4796_v56  ;;  %3148 = vmatpush1.bf16.msra.mxu0 %v4854_v24  ;;  %v4877_v56 = vld [vmem:[%s6663_s3 + $0xa4] ss:$8 sps:$4 sm:$0xff]  }
  0xd2   :  { %2024 = vmatmul.mubr.bf16.gmra.mrb[8].mxu0 %v5895_v58  ;;  %3149 = vmatprep.subr.bf16.mxu0 %v4859_v25 }
  0xd3   :  { %2403 = vmatmul.mubr.bf16.gmra.mrb[56].mxu1 %v5770_v27  ;;  %2033 = vmatprep.mubr.bf16.mxu0 %v5903_v60  ;;  %v6023_v27 = vld [vmem:[%s6662_s0 + $0x160] ss:$28 sps:$4 sm:$0xff]  }
  0xd4   :  { %2448 = vmatpush1.bf16.msra.mxu1 %v4794_v59  ;;  %2412 = vmatprep.mubr.bf16.mxu1 %v5787_v32  ;;  %v4862_v32 = vld [vmem:[%s6663_s3 + $0x54] ss:$8 sps:$4 sm:$0xff]   ;;  %v4875_v59 = vld [vmem:[%s6663_s3 + $0xa0] ss:$8 sps:$4 sm:$0xff]  }
  0xd5   :  { %2449 = vmatprep.subr.bf16.mxu1 %v4799_v61  ;;  %3150 = vmatpush1.bf16.msra.mxu0 %v4857_v29  ;;  %v4880_v61 = vld [vmem:[%s6663_s3 + $0xb4] ss:$8 sps:$4 sm:$0xff]  }
  0xd6   :  { %3151 = vmatprep.subr.bf16.mxu0 %v4862_v32  ;;  %v4959_v32 = vld [vmem:[%s6662_s0 + $0x88] ss:$28 sps:$4 sm:$0xff]  }
  0xd8   :  { %2450 = vmatpush1.bf16.msra.mxu1 %v4797_v62 }
  0xd9   :  { %2451 = vmatprep.subr.bf16.mxu1 %v4805_v63  ;;  %3152 = vmatpush1.bf16.msra.mxu0 %v4860_v34  ;;  %v4895_v34 = vld [vmem:[%s6663_s3 + $0x104] ss:$8 sps:$4 sm:$0xff]  }
  0xda   :  { %2034 = vmatmul.mubr.bf16.gmra.mrb[12].mxu0 %v5921_v0  ;;  %3153 = vmatprep.subr.bf16.mxu0 %v4865_v35  ;;  %v4961_v35 = vld [vmem:[%s6662_s0 + $0xf8] ss:$28 sps:$4 sm:$0xff]  }
  0xdb   :  { %2413 = vmatmul.mubr.bf16.gmra.mrb[60].mxu1 %v5808_v37  ;;  %2043 = vmatprep.mubr.bf16.mxu0 %v5929_v3  ;;  %v4841_v37 = vld [vmem:[%s6661_s1 + $0x6cc] ss:$16 sps:$4 sm:$0xff]  }
  0xdc   :  { %2452 = vmatpush1.bf16.msra.mxu1 %v4803_v2  ;;  %2455 = vmatprep.mubr.bf16.mxu1 %v5825_v42  ;;  %v4883_v2 = vld [vmem:[%s6663_s3 + $0xc4] ss:$8 sps:$4 sm:$0xff]  }
  0xdd   :  { %2453 = vmatprep.subr.bf16.mxu1 %v4808_v4  ;;  %3154 = vmatpush1.bf16.msra.mxu0 %v4863_v38  ;;  %v4881_v4 = vld [vmem:[%s6663_s3 + $0xc0] ss:$8 sps:$4 sm:$0xff]  }
  0xde   :  { %3155 = vmatprep.subr.bf16.mxu0 %v4868_v41  ;;  %v4964_v38 = vld [vmem:[%s6662_s0 + $0x1a0] ss:$28 sps:$4 sm:$0xff]  }
  0xe0   :  { %2454 = vmatpush1.bf16.msra.mxu1 %v4806_v5 }
  0xe1   :  { %2536 = vmatprep.subr.bf16.mxu1 %v4814_v6  ;;  %3156 = vmatpush1.bf16.msra.mxu0 %v4866_v47 }
  0xe2   :  { %2044 = vmatmul.mubr.bf16.gmra.mrb[16].mxu0 %v5956_v10 }
  0xe3   :  { %2456 = vmatmul.mubr.bf16.vlgmr.msra.gmra.mrb[32].mxu1 %v5843_v46  ;;  %2053 = vmatprep.mubr.bf16.mxu0 %v5964_v12  ;;  %v4844_v46 = vld [vmem:[%s6661_s1 + $0x6ec] ss:$16 sps:$4 sm:$0xff]  }
  0xe4   :  { %2537 = vmatpush1.bf16.msra.mxu1 %v4812_v11  ;;  %2465 = vmatprep.mubr.bf16.mxu1 %v5851_v48  ;;  %v4871_v48 = vld [vmem:[%s6663_s3 + $0x84] ss:$8 sps:$4 sm:$0xff]  }
  0xe5   :  { %2538 = vmatprep.subr.bf16.mxu1 %v4820_v13  ;;  %3157 = vmatprep.subr.bf16.mxu0 %v4871_v48 }
  0xe6   :  { %3158 = vmatpush1.bf16.msra.mxu0 %v4869_v51 }
  0xe7   :  { %3159 = vmatprep.subr.bf16.mxu0 %v4874_v53 }
  0xe8   :  { %2539 = vmatpush1.bf16.msra.mxu1 %v4818_v16  ;;  %v4892_v16 = vld [vmem:[%s6663_s3 + $0xf4] ss:$8 sps:$4 sm:$0xff]  }
  0xe9   :  { %2540 = vmatprep.subr.bf16.mxu1 %v4826_v17 }
  0xea   :  { %2054 = vmatmul.mubr.bf16.gmra.mrb[20].mxu0 %v5991_v19 }
  0xeb   :  { %2466 = vmatmul.mubr.bf16.gmra.mrb[36].mxu1 %v5869_v52  ;;  %2063 = vmatprep.mubr.bf16.mxu0 %v5996_v20 }
  0xec   :  { %2475 = vmatprep.mubr.bf16.mxu1 %v5877_v54  ;;  %2541 = vmatpush1.bf16.msra.mxu1 %v4824_v21 }
  0xed   :  { %2542 = vmatprep.subr.bf16.mxu1 %v4832_v23  ;;  %3160 = vmatpush1.bf16.msra.mxu0 %v4872_v57 }
  0xee   :  { %3161 = vmatprep.subr.bf16.mxu0 %v4877_v56 }
  0xf0   :  { %2543 = vmatpush1.bf16.msra.mxu1 %v4830_v26 }
  0xf1   :  { %2544 = vmatprep.subr.bf16.mxu1 %v4835_v28  ;;  %3162 = vmatpush1.bf16.msra.mxu0 %v4875_v59 }
  0xf2   :  { %2064 = vmatmul.mubr.bf16.gmra.mrb[24].mxu0 %v6023_v27  ;;  %3163 = vmatprep.subr.bf16.mxu0 %v4880_v61 }
  0xf3   :  { %2476 = vmatmul.mubr.bf16.gmra.mrb[40].mxu1 %v5895_v58  ;;  %2073 = vmatprep.mubr.bf16.mxu0 %v6034_v30 }
  0xf4   :  { %2485 = vmatprep.mubr.bf16.mxu1 %v5903_v60  ;;  %2545 = vmatpush1.bf16.msra.mxu1 %v4833_v31 }
  0xf5   :  { %2546 = vmatprep.subr.bf16.mxu1 %v4838_v33  ;;  %v4960_v33 = vld [vmem:[%s6662_s0 + $0xc0] ss:$28 sps:$4 sm:$0xff]  }
  0xf6   :  { %v6069_v40 = vpop.f32.mrb[0].mxu1 }
  0xf7   :  { %v6074_v42 = vpop.f32.mrb[1].mxu1 }
  0xf8   :  { %v6079_v44 = vpop.f32.mrb[2].mxu1  ;;  %2547 = vmatpush1.bf16.msra.mxu1 %v4836_v36  ;;  %v4962_v36 = vld [vmem:[%s6662_s0 + $0x130] ss:$28 sps:$4 sm:$0xff]  }
  0xf9   :  { %v6081_v45 = vpop.f32.mrb[3].mxu1  ;;  %2548 = vmatprep.subr.bf16.mxu1 %v4841_v37  ;;  %v4963_v37 = vld [vmem:[%s6662_s0 + $0x168] ss:$28 sps:$4 sm:$0xff]  }
  0xfa   :  { %2074 = vmatmul.mubr.bf16.gmra.mrb[28].mxu0 %v6067_v39 }
  0xfb   :  { %2486 = vmatmul.mubr.bf16.gmra.mrb[44].mxu1 %v5921_v0  ;;  %v4878_v0 = vld [vmem:[%s6663_s3 + $0xb0] ss:$8 sps:$4 sm:$0xff]  }
  0xfc   :  { %2495 = vmatprep.mubr.bf16.mxu1 %v5929_v3  ;;  %2549 = vmatpush1.bf16.msra.mxu1 %v4839_v43 }
  0xfd   :  { %2550 = vmatprep.subr.bf16.mxu1 %v4844_v46  ;;  %3164 = vmatpush1.bf16.msra.mxu0 %v4878_v0  ;;  %v6247_v46 = vld [vmem:[%s6664_s2] sm:$0xf] }
  0xfe   :  { %v6098_v50 = vpop.f32.mrb[4].mxu1  ;;  %3165 = vmatprep.subr.bf16.mxu0 %v4883_v2 }
  0xff   :  { %v6103_v52 = vpop.f32.mrb[5].mxu1 }
 0x100   :  { %v6108_v54 = vpop.f32.mrb[6].mxu1  ;;  %2551 = vmatpush1.bf16.msra.mxu1 %v4842_v49 }
 0x101   :  { %v6110_v55 = vpop.f32.mrb[7].mxu1  ;;  %3166 = vmatpush1.bf16.msra.mxu0 %v4881_v4 }
 0x102   :  { %3167 = vmatprep.subr.bf16.mxu0 %v4886_v8 }
 0x103   :  { %2496 = vmatmul.mubr.bf16.gmra.mrb[48].mxu1 %v5956_v10  ;;  %v4884_v10 = vld [vmem:[%s6663_s3 + $0xd0] ss:$8 sps:$4 sm:$0xff]  }
 0x104   :  { %2505 = vmatprep.mubr.bf16.mxu1 %v5964_v12 }
 0x105   :  { %3168 = vmatpush1.bf16.msra.mxu0 %v4884_v10 }
 0x106   :  { %v6120_v58 = vpop.f32.mrb[8].mxu1  ;;  %3169 = vmatprep.subr.bf16.mxu0 %v4889_v14 }
 0x107   :  { %v6125_v60 = vpop.f32.mrb[9].mxu1 }
 0x108   :  { %v6130_v62 = vpop.f32.mrb[10].mxu1 }
 0x109   :  { %v6132_v63 = vpop.f32.mrb[11].mxu1  ;;  %3170 = vmatpush1.bf16.msra.mxu0 %v4887_v15 }
 0x10a   :  { %3171 = vmatprep.subr.bf16.mxu0 %v4892_v16 }
 0x10b   :  { %2506 = vmatmul.mubr.bf16.gmra.mrb[52].mxu1 %v5991_v19 }
 0x10c   :  { %2515 = vmatprep.mubr.bf16.mxu1 %v5996_v20 }
 0x10d   :  { %3172 = vmatpush1.bf16.msra.mxu0 %v4890_v18 }
 0x10e   :  { %v6142_v3 = vpop.f32.mrb[12].mxu1  ;;  %3254 = vmatprep.subr.bf16.mxu0 %v4895_v34 }
 0x10f   :  { %v6147_v5 = vpop.f32.mrb[13].mxu1 }
 0x110   :  { %v6149_v6 = vpop.f32.mrb[14].mxu1 }
 0x111   :  { %v6151_v7 = vpop.f32.mrb[15].mxu1 }
 0x113   :  { %2516 = vmatmul.mubr.bf16.gmra.mrb[56].mxu1 %v6023_v27  ;;  %v4958_v27 = vld [vmem:[%s6662_s0 + $0x50] ss:$28 sps:$4 sm:$0xff]  }
 0x114   :  { %2525 = vmatprep.mubr.bf16.mxu1 %v6034_v30 }
 0x116   :  { %v6158_v9 = vpop.f32.mrb[16].mxu1 }
 0x117   :  { %v6163_v11 = vpop.f32.mrb[17].mxu1 }
 0x118   :  { %v6165_v12 = vpop.f32.mrb[18].mxu1 }
 0x119   :  { %v6167_v13 = vpop.f32.mrb[19].mxu1 }
 0x11b   :  { %2526 = vmatmul.mubr.bf16.gmra.mrb[60].mxu1 %v6067_v39  ;;  %v317_v39 = vlaneseq }
 0x11c   :  { %2568 = vmatprep.mubr.bf16.mxu1 %v4965_v1 }
 0x11d   :  { %v6241_v41 = vshrl.u32 %v317_v39, 7 }
 0x11e   :  { %v6180_v17 = vpop.f32.mrb[20].mxu1 }
 0x11f   :  { %v6185_v19 = vpop.f32.mrb[21].mxu1  ;;  %v319_v43 = vsub.s32 0, %v6241_v41  ;;  %v323_v47 = vsub.s32 1, %v6241_v41 }
 0x120   :  { %v6187_v20 = vpop.f32.mrb[22].mxu1 }
 0x121   :  { %v6189_v21 = vpop.f32.mrb[23].mxu1  ;;  %v6258_v48 = vrot.slane %v6247_v46, %v323_v47 }
 0x123   :  { %2569 = vmatmul.mubr.bf16.vlgmr.msra.gmra.mrb[32].mxu1 %v4957_v22 }
 0x124   :  { %2578 = vmatprep.mubr.bf16.mxu1 %v4965_v1 }
 0x126   :  { %v6195_v23 = vpop.f32.mrb[24].mxu1 }
 0x127   :  { %v6197_v24 = vpop.f32.mrb[25].mxu1 }
 0x128   :  { %v6199_v25 = vpop.f32.mrb[26].mxu1 }
 0x129   :  { %v6201_v26 = vpop.f32.mrb[27].mxu1 }
 0x12b   :  { %2579 = vmatmul.mubr.bf16.gmra.mrb[36].mxu1 %v4958_v27 }
 0x12c   :  { %2588 = vmatprep.mubr.bf16.mxu1 %v4965_v1 }
 0x12e   :  { %v6207_v28 = vpop.f32.mrb[28].mxu1 }
 0x12f   :  { %v6209_v29 = vpop.f32.mrb[29].mxu1 }
 0x130   :  { %v6211_v30 = vpop.f32.mrb[30].mxu1 }
 0x131   :  { %v6213_v31 = vpop.f32.mrb[31].mxu1 }
 0x133   :  { %2589 = vmatmul.mubr.bf16.gmra.mrb[40].mxu1 %v4959_v32 }
 0x134   :  { %2598 = vmatprep.mubr.bf16.mxu1 %v4965_v1 }
 0x13b   :  { %2599 = vmatmul.mubr.bf16.gmra.mrb[44].mxu1 %v4960_v33 }
 0x13c   :  { %2608 = vmatprep.mubr.bf16.mxu1 %v4965_v1 }
 0x143   :  { %2609 = vmatmul.mubr.bf16.gmra.mrb[48].mxu1 %v4961_v35 }
 0x144   :  { %2618 = vmatprep.mubr.bf16.mxu1 %v4965_v1 }
 0x14b   :  { %2619 = vmatmul.mubr.bf16.gmra.mrb[52].mxu1 %v4962_v36 }
 0x14c   :  { %2628 = vmatprep.mubr.bf16.mxu1 %v4965_v1 }
 0x153   :  { %2629 = vmatmul.mubr.bf16.gmra.mrb[56].mxu1 %v4963_v37  ;;  %v4898_v37 = vld [vmem:[%s6663_s3 + $0x114] ss:$8 sps:$4 sm:$0xff]  }
 0x154   :  { %2638 = vmatprep.mubr.bf16.mxu1 %v4965_v1  ;;  %v6253_v1 = vrot.slane %v6247_v46, %v319_v43 }
 0x15b   :  { %2639 = vmatmul.mubr.bf16.gmra.mrb[60].mxu1 %v4964_v38 }
 0x195   :  { %v2005_v49 = vpop.f32.mrb[0].mxu0 }
 0x196   :  { %v4108_v51 = vadd.f32 %v2005_v49, %v6253_v1  ;;  %v2007_v53 = vpop.f32.mrb[1].mxu0 }
 0x197   :  { %v4110_v57 = vadd.f32 %v2007_v53, %v6258_v48  ;;  %v2009_v56 = vpop.f32.mrb[2].mxu0 }
 0x198   :  { %v4109_v59 = vadd.f32 %v4108_v51, %v6069_v40  ;;  %v4112_v61 = vadd.f32 %v2009_v56, %v6253_v1  ;;  %v2011_v0 = vpop.f32.mrb[3].mxu0 }
 0x199   :  { %v4111_v2 = vadd.f32 %v4110_v57, %v6074_v42  ;;  %v4114_v4 = vadd.f32 %v2011_v0, %v6258_v48  ;;  %v4893_v42 = vld [vmem:[%s6663_s3 + $0x100] ss:$8 sps:$4 sm:$0xff]  }
 0x19a   :  { %v4113_v8 = vadd.f32 %v4112_v61, %v6079_v44  ;;  %v2649_v14 = vmax.f32 %v4109_v59, 0.0 }
 0x19b   :  { %v4115_v10 = vadd.f32 %v4114_v4, %v6081_v45  ;;  %v2650_v16 = vmax.f32 %v4111_v2, 0.0 }
 0x19c   :  { %v2653_v15 = vmax.f32 %v4113_v8, 0.0 }
 0x19d   :  { %v2654_v18 = vmax.f32 %v4115_v10, 0.0  ;;  %v2015_v22 = vpop.f32.mrb[4].mxu0  ;;  %v4899_v10 = vld [vmem:[%s6663_s3 + $0x120] ss:$8 sps:$4 sm:$0xff]  }
 0x19e   :  { %v2713_v27 = vpack.c.bf16 %v2653_v15, %v2649_v14  ;;  %v4116_v32 = vadd.f32 %v2015_v22, %v6253_v1  ;;  %v2017_v40 = vpop.f32.mrb[5].mxu0 }
 0x19f   :  { %v4118_v33 = vadd.f32 %v2017_v40, %v6258_v48  ;;  %v2019_v34 = vpop.f32.mrb[6].mxu0  ;;  %v2714_v35 = vpack.c.bf16 %v2654_v18, %v2650_v16  ;;  %v4904_v18 = vld [vmem:[%s6663_s3 + $0x134] ss:$8 sps:$4 sm:$0xff]  }
 0x1a0   :  { %v4117_v44 = vadd.f32 %v4116_v32, %v6098_v50  ;;  %v4120_v45 = vadd.f32 %v2019_v34, %v6253_v1  ;;  %v2021_v36 = vpop.f32.mrb[7].mxu0  ;;  %v4896_v50 = vld [vmem:[%s6663_s3 + $0x110] ss:$8 sps:$4 sm:$0xff]  }
 0x1a1   :  { %v4119_v38 = vadd.f32 %v4118_v33, %v6103_v52  ;;  %v4122_v39 = vadd.f32 %v2021_v36, %v6258_v48  ;;  %3173 = vmatprep.mubr.bf16.mxu0 %v2714_v35  ;;  %v4901_v52 = vld [vmem:[%s6663_s3 + $0x124] ss:$8 sps:$4 sm:$0xff]  }
 0x1a2   :  { %v4121_v49 = vadd.f32 %v4120_v45, %v6108_v54  ;;  %3174 = vmatmul.mubr.bf16.vlgmr.msra.gmra.mrb[32].mxu0 %v2713_v27  ;;  %v2657_v53 = vmax.f32 %v4117_v44, 0.0 }
 0x1a3   :  { %v4123_v51 = vadd.f32 %v4122_v39, %v6110_v55  ;;  %3255 = vmatpush1.bf16.msra.mxu0 %v4893_v42  ;;  %v2658_v56 = vmax.f32 %v4119_v38, 0.0  ;;  %v4905_v39 = vld [vmem:[%s6663_s3 + $0x140] ss:$8 sps:$4 sm:$0xff]  }
 0x1a4   :  { %v2661_v57 = vmax.f32 %v4121_v49, 0.0  ;;  %3256 = vmatprep.subr.bf16.mxu0 %v4898_v37 }
 0x1a5   :  { %v2662_v59 = vmax.f32 %v4123_v51, 0.0  ;;  %v2025_v61 = vpop.f32.mrb[8].mxu0 }
 0x1a6   :  { %v4124_v54 = vadd.f32 %v2025_v61, %v6253_v1  ;;  %v2027_v0 = vpop.f32.mrb[9].mxu0  ;;  %v2717_v2 = vpack.c.bf16 %v2661_v57, %v2657_v53  ;;  %v4910_v53 = vld [vmem:[%s6663_s3 + $0x154] ss:$8 sps:$4 sm:$0xff]  }
 0x1a7   :  { %v4126_v55 = vadd.f32 %v2027_v0, %v6258_v48  ;;  %v2029_v4 = vpop.f32.mrb[10].mxu0  ;;  %v2718_v8 = vpack.c.bf16 %v2662_v59, %v2658_v56  ;;  %3257 = vmatpush1.bf16.msra.mxu0 %v4896_v50 }
 0x1a8   :  { %v4125_v14 = vadd.f32 %v4124_v54, %v6120_v58  ;;  %v4128_v15 = vadd.f32 %v2029_v4, %v6253_v1  ;;  %v2031_v16 = vpop.f32.mrb[11].mxu0  ;;  %3258 = vmatprep.subr.bf16.mxu0 %v4901_v52  ;;  %v4902_v58 = vld [vmem:[%s6663_s3 + $0x130] ss:$8 sps:$4 sm:$0xff]  }
 0x1a9   :  { %v4127_v22 = vadd.f32 %v4126_v55, %v6125_v60  ;;  %v4130_v27 = vadd.f32 %v2031_v16, %v6258_v48  ;;  %3183 = vmatprep.mubr.bf16.mxu0 %v2718_v8  ;;  %v4907_v60 = vld [vmem:[%s6663_s3 + $0x144] ss:$8 sps:$4 sm:$0xff]  }
 0x1aa   :  { %v4129_v32 = vadd.f32 %v4128_v15, %v6130_v62  ;;  %3184 = vmatmul.mubr.bf16.gmra.mrb[36].mxu0 %v2717_v2  ;;  %v2665_v33 = vmax.f32 %v4125_v14, 0.0  ;;  %v4911_v15 = vld [vmem:[%s6663_s3 + $0x160] ss:$8 sps:$4 sm:$0xff]  }
 0x1ab   :  { %v4131_v40 = vadd.f32 %v4130_v27, %v6132_v63  ;;  %3259 = vmatpush1.bf16.msra.mxu0 %v4899_v10  ;;  %v2666_v35 = vmax.f32 %v4127_v22, 0.0  ;;  %v4916_v27 = vld [vmem:[%s6663_s3 + $0x174] ss:$8 sps:$4 sm:$0xff]  }
 0x1ac   :  { %v2669_v34 = vmax.f32 %v4129_v32, 0.0  ;;  %3260 = vmatprep.subr.bf16.mxu0 %v4904_v18 }
 0x1ad   :  { %v2670_v42 = vmax.f32 %v4131_v40, 0.0  ;;  %v2035_v44 = vpop.f32.mrb[12].mxu0 }
 0x1ae   :  { %v4132_v62 = vadd.f32 %v2035_v44, %v6253_v1  ;;  %v2037_v45 = vpop.f32.mrb[13].mxu0  ;;  %v2721_v36 = vpack.c.bf16 %v2669_v34, %v2665_v33  ;;  %v4919_v34 = vld [vmem:[%s6663_s3 + $0x184] ss:$8 sps:$4 sm:$0xff]  }
 0x1af   :  { %v4134_v63 = vadd.f32 %v2037_v45, %v6258_v48  ;;  %v2039_v37 = vpop.f32.mrb[14].mxu0  ;;  %v2722_v38 = vpack.c.bf16 %v2670_v42, %v2666_v35  ;;  %3261 = vmatpush1.bf16.msra.mxu0 %v4902_v58  ;;  %v4914_v58 = vld [vmem:[%s6663_s3 + $0x170] ss:$8 sps:$4 sm:$0xff]  }
 0x1b0   :  { %v4133_v49 = vadd.f32 %v4132_v62, %v6142_v3  ;;  %v4136_v51 = vadd.f32 %v2039_v37, %v6253_v1  ;;  %v2041_v50 = vpop.f32.mrb[15].mxu0  ;;  %3262 = vmatprep.subr.bf16.mxu0 %v4907_v60  ;;  %v4908_v3 = vld [vmem:[%s6663_s3 + $0x150] ss:$8 sps:$4 sm:$0xff]  }
 0x1b1   :  { %v4135_v57 = vadd.f32 %v4134_v63, %v6147_v5  ;;  %v4138_v52 = vadd.f32 %v2041_v50, %v6258_v48  ;;  %3193 = vmatprep.mubr.bf16.mxu0 %v2722_v38  ;;  %v4913_v5 = vld [vmem:[%s6663_s3 + $0x164] ss:$8 sps:$4 sm:$0xff]   ;;  %v4922_v38 = vld [vmem:[%s6663_s3 + $0x194] ss:$8 sps:$4 sm:$0xff]  }
 0x1b2   :  { %v4137_v56 = vadd.f32 %v4136_v51, %v6149_v6  ;;  %3194 = vmatmul.mubr.bf16.gmra.mrb[40].mxu0 %v2721_v36  ;;  %v2673_v61 = vmax.f32 %v4133_v49, 0.0  ;;  %v4917_v36 = vld [vmem:[%s6663_s3 + $0x180] ss:$8 sps:$4 sm:$0xff]  }
 0x1b3   :  { %v4139_v59 = vadd.f32 %v4138_v52, %v6151_v7  ;;  %3263 = vmatpush1.bf16.msra.mxu0 %v4905_v39  ;;  %v2674_v0 = vmax.f32 %v4135_v57, 0.0  ;;  %v6376_v39 = vld [vmem:[%s6665_s5 + $0x8] sm:$0xff]  }
 0x1b4   :  { %v2677_v54 = vmax.f32 %v4137_v56, 0.0  ;;  %3264 = vmatprep.subr.bf16.mxu0 %v4910_v53  ;;  %v6382_v53 = vld [vmem:[%s6665_s5 + $0x50] sm:$0xff]  }
 0x1b5   :  { %v2678_v2 = vmax.f32 %v4139_v59, 0.0  ;;  %v2045_v55 = vpop.f32.mrb[16].mxu0 }
 0x1b6   :  { %v4140_v6 = vadd.f32 %v2045_v55, %v6253_v1  ;;  %v2047_v4 = vpop.f32.mrb[17].mxu0  ;;  %v2725_v8 = vpack.c.bf16 %v2677_v54, %v2673_v61  ;;  %v4920_v61 = vld [vmem:[%s6663_s3 + $0x190] ss:$8 sps:$4 sm:$0xff]  }
 0x1b7   :  { %v4142_v7 = vadd.f32 %v2047_v4, %v6258_v48  ;;  %v2049_v10 = vpop.f32.mrb[18].mxu0  ;;  %v2726_v14 = vpack.c.bf16 %v2678_v2, %v2674_v0  ;;  %3265 = vmatpush1.bf16.msra.mxu0 %v4908_v3  ;;  %v6406_v0 = vld [vmem:[%s6665_s5 + $0x58] sm:$0xff]  }
 0x1b8   :  { %v4141_v16 = vadd.f32 %v4140_v6, %v6158_v9  ;;  %v4144_v18 = vadd.f32 %v2049_v10, %v6253_v1  ;;  %v2051_v22 = vpop.f32.mrb[19].mxu0  ;;  %3266 = vmatprep.subr.bf16.mxu0 %v4913_v5  ;;  %v6346_v9 = vld [vmem:[%s6665_s5 + $0x40] sm:$0xff]  }
 0x1b9   :  { %v4143_v32 = vadd.f32 %v4142_v7, %v6163_v11  ;;  %v4146_v40 = vadd.f32 %v2051_v22, %v6258_v48  ;;  %3203 = vmatprep.mubr.bf16.mxu0 %v2726_v14  ;;  %v6355_v11 = vld [vmem:[%s6665_s5] sm:$0xff]   ;;  %4092 = vmatprep.subr.bf16.mxu1 %v6346_v9  ;;  %v4928_v14 = vld [vmem:[%s6663_s3 + $0x1b4] ss:$8 sps:$4 sm:$0xff]  }
 0x1ba   :  { %v4145_v33 = vadd.f32 %v4144_v18, %v6165_v12  ;;  %3204 = vmatmul.mubr.bf16.gmra.mrb[44].mxu0 %v2725_v8  ;;  %v2681_v60 = vmax.f32 %v4141_v16, 0.0  ;;  %v6362_v12 = vld [vmem:[%s6665_s5 + $0x48] sm:$0xff]   ;;  %4100 = vmatpush3.bf16.msra.mxu1 %v6355_v11 }
 0x1bb   :  { %v4147_v35 = vadd.f32 %v4146_v40, %v6167_v13  ;;  %3267 = vmatpush1.bf16.msra.mxu0 %v4911_v15  ;;  %v2682_v42 = vmax.f32 %v4143_v32, 0.0  ;;  %4093 = vmatprep.subr.bf16.mxu1 %v6362_v12  ;;  %v4923_v8 = vld [vmem:[%s6663_s3 + $0x1a0] ss:$8 sps:$4 sm:$0xff]   ;;  %v6420_v15 = vld [vmem:[%s6665_s5 + $0x18] sm:$0xff]  }
 0x1bc   :  { %v2685_v44 = vmax.f32 %v4145_v33, 0.0  ;;  %3268 = vmatprep.subr.bf16.mxu0 %v4916_v27  ;;  %v6426_v27 = vld [vmem:[%s6665_s5 + $0x60] sm:$0xff]  }
 0x1bd   :  { %v2686_v62 = vmax.f32 %v4147_v35, 0.0  ;;  %v2055_v45 = vpop.f32.mrb[20].mxu0 }
 0x1be   :  { %v4148_v13 = vadd.f32 %v2055_v45, %v6253_v1  ;;  %v2057_v63 = vpop.f32.mrb[21].mxu0  ;;  %v2729_v37 = vpack.c.bf16 %v2685_v44, %v2681_v60  ;;  %4101 = vmatpush3.bf16.msra.mxu1 %v6376_v39 }
 0x1bf   :  { %v4150_v49 = vadd.f32 %v2057_v63, %v6258_v48  ;;  %v2059_v51 = vpop.f32.mrb[22].mxu0  ;;  %v2730_v50 = vpack.c.bf16 %v2686_v62, %v2682_v42  ;;  %3269 = vmatpush1.bf16.msra.mxu0 %v4914_v58  ;;  %4094 = vmatprep.subr.bf16.mxu1 %v6382_v53  ;;  %v6447_v42 = vld [vmem:[%s6665_s5 + $0x68] sm:$0xff]  }
 0x1c0   :  { %v4149_v57 = vadd.f32 %v4148_v13, %v6180_v17  ;;  %v4152_v52 = vadd.f32 %v2059_v51, %v6253_v1  ;;  %v2061_v56 = vpop.f32.mrb[23].mxu0  ;;  %3270 = vmatprep.subr.bf16.mxu0 %v4919_v34  ;;  %v4925_v17 = vld [vmem:[%s6663_s3 + $0x1a4] ss:$8 sps:$4 sm:$0xff]  }
 0x1c1   :  { %v4151_v59 = vadd.f32 %v4150_v49, %v6185_v19  ;;  %v4154_v3 = vadd.f32 %v2061_v56, %v6258_v48  ;;  %3213 = vmatprep.mubr.bf16.mxu0 %v2730_v50  ;;  %v6400_v19 = vld [vmem:[%s6665_s5 + $0x10] sm:$0xff]   ;;  %v4931_v62 = vld [vmem:[%s6663_s3 + $0x1c4] ss:$8 sps:$4 sm:$0xff]   ;;  %v4929_v50 = vld [vmem:[%s6663_s3 + $0x1c0] ss:$8 sps:$4 sm:$0xff]  }
 0x1c2   :  { %v4153_v54 = vadd.f32 %v4152_v52, %v6187_v20  ;;  %3214 = vmatmul.mubr.bf16.gmra.mrb[48].mxu0 %v2729_v37  ;;  %v2689_v2 = vmax.f32 %v4149_v57, 0.0  ;;  %4102 = vmatpush3.bf16.msra.mxu1 %v6400_v19 }
 0x1c3   :  { %v4155_v5 = vadd.f32 %v4154_v3, %v6189_v21  ;;  %3271 = vmatpush1.bf16.msra.mxu0 %v4917_v36  ;;  %v2690_v20 = vmax.f32 %v4151_v59, 0.0  ;;  %4095 = vmatprep.subr.bf16.mxu1 %v6406_v0  ;;  %v4934_v59 = vld [vmem:[%s6663_s3 + $0x1d4] ss:$8 sps:$4 sm:$0xff]  }
 0x1c4   :  { %v2693_v55 = vmax.f32 %v4153_v54, 0.0  ;;  %3272 = vmatprep.subr.bf16.mxu0 %v4922_v38 }
 0x1c5   :  { %v2694_v6 = vmax.f32 %v4155_v5, 0.0  ;;  %v2065_v4 = vpop.f32.mrb[24].mxu0 }
 0x1c6   :  { %v4156_v21 = vadd.f32 %v2065_v4, %v6253_v1  ;;  %v2067_v7 = vpop.f32.mrb[25].mxu0  ;;  %v2733_v10 = vpack.c.bf16 %v2693_v55, %v2689_v2  ;;  %4103 = vmatpush3.bf16.msra.mxu1 %v6420_v15  ;;  %v327_v4 = vsub.s32 2, %v6241_v41 }
 0x1c7   :  { %v4158_v16 = vadd.f32 %v2067_v7, %v6258_v48  ;;  %v2069_v18 = vpop.f32.mrb[26].mxu0  ;;  %v2734_v22 = vpack.c.bf16 %v2694_v6, %v2690_v20  ;;  %3273 = vmatpush1.bf16.msra.mxu0 %v4920_v61  ;;  %4096 = vmatprep.subr.bf16.mxu1 %v6426_v27  ;;  %v4938_v6 = vld [vmem:[%s6663_s3 + $0x1f0] ss:$8 sps:$4 sm:$0xff]  }
 0x1c8   :  { %v4157_v32 = vadd.f32 %v4156_v21, %v6195_v23  ;;  %v4160_v40 = vadd.f32 %v2069_v18, %v6253_v1  ;;  %v2071_v58 = vpop.f32.mrb[27].mxu0  ;;  %3274 = vmatprep.subr.bf16.mxu0 %v4925_v17  ;;  %v6438_v23 = vld [vmem:[%s6665_s5 + $0x20] sm:$0xff]   ;;  %v6487_v21 = vrot.slane %v6247_v46, %v327_v4 }
 0x1c9   :  { %v4159_v33 = vadd.f32 %v4158_v16, %v6197_v24  ;;  %v4162_v34 = vadd.f32 %v2071_v58, %v6258_v48  ;;  %3223 = vmatprep.mubr.bf16.mxu0 %v2734_v22  ;;  %v4926_v24 = vld [vmem:[%s6663_s3 + $0x1b0] ss:$8 sps:$4 sm:$0xff]  }
 0x1ca   :  { %v4161_v60 = vadd.f32 %v4160_v40, %v6199_v25  ;;  %3224 = vmatmul.mubr.bf16.gmra.mrb[52].mxu0 %v2733_v10  ;;  %v2697_v44 = vmax.f32 %v4157_v32, 0.0  ;;  %4104 = vmatpush3.bf16.msra.mxu1 %v6438_v23 }
 0x1cb   :  { %v4163_v35 = vadd.f32 %v4162_v34, %v6201_v26  ;;  %3275 = vmatpush1.bf16.msra.mxu0 %v4923_v8  ;;  %v2698_v26 = vmax.f32 %v4159_v33, 0.0  ;;  %4097 = vmatprep.subr.bf16.mxu1 %v6447_v42  ;;  %v331_v8 = vsub.s32 3, %v6241_v41 }
 0x1cc   :  { %v2701_v25 = vmax.f32 %v4161_v60, 0.0  ;;  %3276 = vmatprep.subr.bf16.mxu0 %v4928_v14 }
 0x1cd   :  { %v2702_v45 = vmax.f32 %v4163_v35, 0.0  ;;  %v2075_v36 = vpop.f32.mrb[28].mxu0  ;;  %v6490_v7 = vrot.slane %v6247_v46, %v331_v8 }
 0x1ce   :  { %v4164_v13 = vadd.f32 %v2075_v36, %v6253_v1  ;;  %v2077_v63 = vpop.f32.mrb[29].mxu0  ;;  %v2737_v37 = vpack.c.bf16 %v2701_v25, %v2697_v44 }
 0x1cf   :  { %v4166_v38 = vadd.f32 %v2077_v63, %v6258_v48  ;;  %v2079_v49 = vpop.f32.mrb[30].mxu0  ;;  %v2738_v51 = vpack.c.bf16 %v2702_v45, %v2698_v26  ;;  %3277 = vmatpush1.bf16.msra.mxu0 %v4926_v24 }
 0x1d0   :  { %v4165_v57 = vadd.f32 %v4164_v13, %v6207_v28  ;;  %v4168_v52 = vadd.f32 %v2079_v49, %v6253_v1  ;;  %v2081_v56 = vpop.f32.mrb[31].mxu0  ;;  %3278 = vmatprep.subr.bf16.mxu0 %v4931_v62  ;;  %v4932_v28 = vld [vmem:[%s6663_s3 + $0x1d0] ss:$8 sps:$4 sm:$0xff]  }
 0x1d1   :  { %v4167_v3 = vadd.f32 %v4166_v38, %v6209_v29  ;;  %v4170_v61 = vadd.f32 %v2081_v56, %v6258_v48  ;;  %3233 = vmatprep.mubr.bf16.mxu0 %v2738_v51  ;;  %v4937_v29 = vld [vmem:[%s6663_s3 + $0x1e4] ss:$8 sps:$4 sm:$0xff]  }
 0x1d2   :  { %v4169_v54 = vadd.f32 %v4168_v52, %v6211_v30  ;;  %3234 = vmatmul.mubr.bf16.gmra.mrb[56].mxu0 %v2737_v37  ;;  %v2705_v1 = vmax.f32 %v4165_v57, 0.0  ;;  %v4935_v30 = vld [vmem:[%s6663_s3 + $0x1e0] ss:$8 sps:$4 sm:$0xff]  }
 0x1d3   :  { %v4171_v17 = vadd.f32 %v4170_v61, %v6213_v31  ;;  %3279 = vmatpush1.bf16.msra.mxu0 %v4929_v50  ;;  %v2706_v2 = vmax.f32 %v4167_v3, 0.0  ;;  %v4940_v31 = vld [vmem:[%s6663_s3 + $0x1f4] ss:$8 sps:$4 sm:$0xff]  }
 0x1d4   :  { %v2709_v5 = vmax.f32 %v4169_v54, 0.0  ;;  %3280 = vmatprep.subr.bf16.mxu0 %v4934_v59 }
 0x1d5   :  { %v2710_v48 = vmax.f32 %v4171_v17, 0.0 }
 0x1d6   :  { %v2741_v20 = vpack.c.bf16 %v2709_v5, %v2705_v1 }
 0x1d7   :  { %v2742_v55 = vpack.c.bf16 %v2710_v48, %v2706_v2  ;;  %3281 = vmatpush1.bf16.msra.mxu0 %v4932_v28 }
 0x1d8   :  { %3282 = vmatprep.subr.bf16.mxu0 %v4937_v29 }
 0x1d9   :  { %3243 = vmatprep.mubr.bf16.mxu0 %v2742_v55 }
 0x1da   :  { %3244 = vmatmul.mubr.bf16.gmra.mrb[60].mxu0 %v2741_v20 }
 0x1db   :  { %3283 = vmatpush1.bf16.msra.mxu0 %v4935_v30 }
 0x1dc   :  { %3284 = vmatprep.subr.bf16.mxu0 %v4940_v31 }
 0x1df   :  { %3285 = vmatpush1.bf16.msra.mxu0 %v4938_v6 }
 0x1e0   :  { %4028 = vmatprep.subr.bf16.mxu0 %v6346_v9 }
 0x1f6   :  { %v2570_v10 = vpop.f32.mrb[32].mxu1 }
 0x1f7   :  { %v4172_v14 = vadd.f32 %v2570_v10, %v6487_v21  ;;  %v2572_v16 = vpop.f32.mrb[33].mxu1 }
 0x1f8   :  { %v4173_v18 = vadd.f32 %v2572_v16, %v6490_v7  ;;  %v2574_v22 = vpop.f32.mrb[34].mxu1 }
 0x1f9   :  { %v4174_v32 = vadd.f32 %v2574_v22, %v6487_v21  ;;  %v2576_v9 = vpop.f32.mrb[35].mxu1  ;;  %v2651_v58 = vmax.f32 %v4172_v14, 0.0 }
 0x1fa   :  { %v4175_v40 = vadd.f32 %v2576_v9, %v6490_v7  ;;  %v2652_v34 = vmax.f32 %v4173_v18, 0.0 }
 0x1fb   :  { %v2655_v33 = vmax.f32 %v4174_v32, 0.0 }
 0x1fc   :  { %v2656_v60 = vmax.f32 %v4175_v40, 0.0 }
 0x1fd   :  { %v2715_v35 = vpack.c.bf16 %v2655_v33, %v2651_v58 }
 0x1fe   :  { %v2716_v24 = vpack.c.bf16 %v2656_v60, %v2652_v34  ;;  %v2580_v46 = vpop.f32.mrb[36].mxu1 }
 0x1ff   :  { %v4176_v44 = vadd.f32 %v2580_v46, %v6487_v21  ;;  %v2582_v25 = vpop.f32.mrb[37].mxu1 }
 0x200   :  { %v4177_v62 = vadd.f32 %v2582_v25, %v6490_v7  ;;  %v2584_v26 = vpop.f32.mrb[38].mxu1  ;;  %3286 = vmatprep.mubr.bf16.mxu0 %v2716_v24 }
 0x201   :  { %v4178_v45 = vadd.f32 %v2584_v26, %v6487_v21  ;;  %v2586_v36 = vpop.f32.mrb[39].mxu1  ;;  %3287 = vmatmul.mubr.bf16.vlgmr.msra.gmra.mrb[32].mxu0 %v2715_v35  ;;  %v2659_v63 = vmax.f32 %v4176_v44, 0.0 }
 0x202   :  { %v4179_v13 = vadd.f32 %v2586_v36, %v6490_v7  ;;  %4029 = vmatpush3.bf16.msra.mxu0 %v6355_v11  ;;  %v2660_v38 = vmax.f32 %v4177_v62, 0.0 }
 0x203   :  { %v2663_v37 = vmax.f32 %v4178_v45, 0.0  ;;  %4030 = vmatprep.subr.bf16.mxu0 %v6362_v12 }
 0x204   :  { %v2664_v49 = vmax.f32 %v4179_v13, 0.0 }
 0x205   :  { %v2719_v51 = vpack.c.bf16 %v2663_v37, %v2659_v63 }
 0x206   :  { %v2720_v50 = vpack.c.bf16 %v2664_v49, %v2660_v38  ;;  %v2590_v57 = vpop.f32.mrb[40].mxu1  ;;  %4031 = vmatpush3.bf16.msra.mxu0 %v6376_v39 }
 0x207   :  { %v4180_v52 = vadd.f32 %v2590_v57, %v6487_v21  ;;  %v2592_v56 = vpop.f32.mrb[41].mxu1  ;;  %4032 = vmatprep.subr.bf16.mxu0 %v6382_v53 }
 0x208   :  { %v4181_v59 = vadd.f32 %v2592_v56, %v6490_v7  ;;  %v2594_v3 = vpop.f32.mrb[42].mxu1  ;;  %3296 = vmatprep.mubr.bf16.mxu0 %v2720_v50 }
 0x209   :  { %v4182_v11 = vadd.f32 %v2594_v3, %v6487_v21  ;;  %v2596_v61 = vpop.f32.mrb[43].mxu1  ;;  %3297 = vmatmul.mubr.bf16.gmra.mrb[36].mxu0 %v2719_v51  ;;  %v2667_v54 = vmax.f32 %v4180_v52, 0.0 }
 0x20a   :  { %v4183_v12 = vadd.f32 %v2596_v61, %v6490_v7  ;;  %4033 = vmatpush3.bf16.msra.mxu0 %v6400_v19  ;;  %v2668_v39 = vmax.f32 %v4181_v59, 0.0 }
 0x20b   :  { %v2671_v17 = vmax.f32 %v4182_v11, 0.0  ;;  %4034 = vmatprep.subr.bf16.mxu0 %v6406_v0 }
 0x20c   :  { %v2672_v28 = vmax.f32 %v4183_v12, 0.0 }
 0x20d   :  { %v2723_v1 = vpack.c.bf16 %v2671_v17, %v2667_v54 }
 0x20e   :  { %v2724_v53 = vpack.c.bf16 %v2672_v28, %v2668_v39  ;;  %v2600_v5 = vpop.f32.mrb[44].mxu1  ;;  %4035 = vmatpush3.bf16.msra.mxu0 %v6420_v15 }
 0x20f   :  { %v4184_v29 = vadd.f32 %v2600_v5, %v6487_v21  ;;  %v2602_v2 = vpop.f32.mrb[45].mxu1  ;;  %4036 = vmatprep.subr.bf16.mxu0 %v6426_v27 }
 0x210   :  { %v4185_v48 = vadd.f32 %v2602_v2, %v6490_v7  ;;  %v2604_v20 = vpop.f32.mrb[46].mxu1  ;;  %3306 = vmatprep.mubr.bf16.mxu0 %v2724_v53 }
 0x211   :  { %v4186_v19 = vadd.f32 %v2604_v20, %v6487_v21  ;;  %v2606_v55 = vpop.f32.mrb[47].mxu1  ;;  %3307 = vmatmul.mubr.bf16.gmra.mrb[40].mxu0 %v2723_v1  ;;  %v2675_v30 = vmax.f32 %v4184_v29, 0.0 }
 0x212   :  { %v4187_v0 = vadd.f32 %v2606_v55, %v6490_v7  ;;  %4037 = vmatpush3.bf16.msra.mxu0 %v6438_v23  ;;  %v2676_v15 = vmax.f32 %v4185_v48, 0.0 }
 0x213   :  { %v2679_v31 = vmax.f32 %v4186_v19, 0.0  ;;  %4038 = vmatprep.subr.bf16.mxu0 %v6447_v42 }
 0x214   :  { %v2680_v6 = vmax.f32 %v4187_v0, 0.0 }
 0x215   :  { %v2727_v4 = vpack.c.bf16 %v2679_v31, %v2675_v30 }
 0x216   :  { %v2728_v27 = vpack.c.bf16 %v2680_v6, %v2676_v15  ;;  %v2610_v8 = vpop.f32.mrb[48].mxu1  ;;  %v4952_v6 = vld [vmem:[%s6665_s5 + $0x28] sm:$0xff]  }
 0x217   :  { %v4188_v10 = vadd.f32 %v2610_v8, %v6487_v21  ;;  %v2612_v14 = vpop.f32.mrb[49].mxu1  ;;  %4039 = vmatpush3.bf16.msra.mxu0 %v4952_v6  ;;  %4105 = vmatpush3.bf16.msra.mxu1 %v4952_v6  ;;  %v2809_v8 = vld [vmem:[%s6666_s4] sm:$0x3] }
 0x218   :  { %v4189_v16 = vadd.f32 %v2612_v14, %v6490_v7  ;;  %v2614_v18 = vpop.f32.mrb[50].mxu1  ;;  %3316 = vmatprep.mubr.bf16.mxu0 %v2728_v27  ;;  %v4956_v27 = vld [vmem:[%s6665_s5 + $0x38] sm:$0xff]   ;;  %v6558_v14 = vrot.slane %v2809_v8, %v323_v47 }
 0x219   :  { %v4190_v22 = vadd.f32 %v2614_v18, %v6487_v21  ;;  %v2616_v32 = vpop.f32.mrb[51].mxu1  ;;  %3317 = vmatmul.mubr.bf16.gmra.mrb[44].mxu0 %v2727_v4  ;;  %v2683_v9 = vmax.f32 %v4188_v10, 0.0  ;;  %v4955_v4 = vld [vmem:[%s6665_s5 + $0x78] sm:$0xff]   ;;  %v6554_v10 = vrot.slane %v2809_v8, %v319_v43 }
 0x21a   :  { %v4191_v23 = vadd.f32 %v2616_v32, %v6490_v7  ;;  %v2684_v40 = vmax.f32 %v4189_v16, 0.0 }
 0x21b   :  { %v2687_v42 = vmax.f32 %v4190_v22, 0.0 }
 0x21c   :  { %v2688_v58 = vmax.f32 %v4191_v23, 0.0 }
 0x21d   :  { %v2731_v33 = vpack.c.bf16 %v2687_v42, %v2683_v9 }
 0x21e   :  { %v2732_v34 = vpack.c.bf16 %v2688_v58, %v2684_v40  ;;  %v2620_v60 = vpop.f32.mrb[52].mxu1 }
 0x21f   :  { %v4192_v35 = vadd.f32 %v2620_v60, %v6487_v21  ;;  %v2622_v24 = vpop.f32.mrb[53].mxu1 }
 0x220   :  { %v4193_v46 = vadd.f32 %v2622_v24, %v6490_v7  ;;  %v2624_v44 = vpop.f32.mrb[54].mxu1  ;;  %3326 = vmatprep.mubr.bf16.mxu0 %v2732_v34 }
 0x221   :  { %v4194_v25 = vadd.f32 %v2624_v44, %v6487_v21  ;;  %v2626_v62 = vpop.f32.mrb[55].mxu1  ;;  %3327 = vmatmul.mubr.bf16.gmra.mrb[48].mxu0 %v2731_v33  ;;  %v2691_v45 = vmax.f32 %v4192_v35, 0.0 }
 0x222   :  { %v4195_v26 = vadd.f32 %v2626_v62, %v6490_v7  ;;  %v2692_v13 = vmax.f32 %v4193_v46, 0.0 }
 0x223   :  { %v2695_v36 = vmax.f32 %v4194_v25, 0.0 }
 0x224   :  { %v2696_v63 = vmax.f32 %v4195_v26, 0.0 }
 0x225   :  { %v2735_v37 = vpack.c.bf16 %v2695_v36, %v2691_v45 }
 0x226   :  { %v2736_v38 = vpack.c.bf16 %v2696_v63, %v2692_v13  ;;  %v2630_v49 = vpop.f32.mrb[56].mxu1 }
 0x227   :  { %v4196_v51 = vadd.f32 %v2630_v49, %v6487_v21  ;;  %v2632_v50 = vpop.f32.mrb[57].mxu1 }
 0x228   :  { %v4197_v57 = vadd.f32 %v2632_v50, %v6490_v7  ;;  %v2634_v52 = vpop.f32.mrb[58].mxu1  ;;  %3336 = vmatprep.mubr.bf16.mxu0 %v2736_v38 }
 0x229   :  { %v4198_v56 = vadd.f32 %v2634_v52, %v6487_v21  ;;  %v2636_v59 = vpop.f32.mrb[59].mxu1  ;;  %3337 = vmatmul.mubr.bf16.gmra.mrb[52].mxu0 %v2735_v37  ;;  %v2699_v11 = vmax.f32 %v4196_v51, 0.0 }
 0x22a   :  { %v4199_v3 = vadd.f32 %v2636_v59, %v6490_v7  ;;  %v2700_v12 = vmax.f32 %v4197_v57, 0.0 }
 0x22b   :  { %v2703_v61 = vmax.f32 %v4198_v56, 0.0 }
 0x22c   :  { %v2704_v54 = vmax.f32 %v4199_v3, 0.0 }
 0x22d   :  { %v2739_v17 = vpack.c.bf16 %v2703_v61, %v2699_v11 }
 0x22e   :  { %v2740_v39 = vpack.c.bf16 %v2704_v54, %v2700_v12  ;;  %v2640_v28 = vpop.f32.mrb[60].mxu1 }
 0x22f   :  { %v4200_v1 = vadd.f32 %v2640_v28, %v6487_v21  ;;  %v2642_v53 = vpop.f32.mrb[61].mxu1 }
 0x230   :  { %v4201_v5 = vadd.f32 %v2642_v53, %v6490_v7  ;;  %v2644_v29 = vpop.f32.mrb[62].mxu1  ;;  %3346 = vmatprep.mubr.bf16.mxu0 %v2740_v39 }
 0x231   :  { %v4202_v2 = vadd.f32 %v2644_v29, %v6487_v21  ;;  %v2646_v48 = vpop.f32.mrb[63].mxu1  ;;  %3347 = vmatmul.mubr.bf16.gmra.mrb[56].mxu0 %v2739_v17  ;;  %v2707_v19 = vmax.f32 %v4200_v1, 0.0  ;;  %v4953_v21 = vld [vmem:[%s6665_s5 + $0x70] sm:$0xff]  }
 0x232   :  { %v4203_v20 = vadd.f32 %v2646_v48, %v6490_v7  ;;  %v2708_v0 = vmax.f32 %v4201_v5, 0.0  ;;  %v4954_v7 = vld [vmem:[%s6665_s5 + $0x30] sm:$0xff]   ;;  %4040 = vmatprep.subr.bf16.mxu0 %v4953_v21  ;;  %4098 = vmatprep.subr.bf16.mxu1 %v4953_v21 }
 0x233   :  { %v2711_v55 = vmax.f32 %v4202_v2, 0.0  ;;  %4041 = vmatpush3.bf16.msra.mxu0 %v4954_v7  ;;  %4106 = vmatpush3.bf16.msra.mxu1 %v4954_v7 }
 0x234   :  { %v2712_v30 = vmax.f32 %v4203_v20, 0.0  ;;  %4042 = vmatprep.subr.bf16.mxu0 %v4955_v4  ;;  %4099 = vmatprep.subr.bf16.mxu1 %v4955_v4 }
 0x235   :  { %v2743_v31 = vpack.c.bf16 %v2711_v55, %v2707_v19 }
 0x236   :  { %v2744_v15 = vpack.c.bf16 %v2712_v30, %v2708_v0 }
 0x237   :  { %4043 = vmatpush3.bf16.msra.mxu0 %v4956_v27  ;;  %4107 = vmatpush3.bf16.msra.mxu1 %v4956_v27 }
 0x238   :  { %3356 = vmatprep.mubr.bf16.mxu0 %v2744_v15 }
 0x239   :  { %3357 = vmatmul.mubr.bf16.gmra.mrb[60].mxu0 %v2743_v31 }
 0x2d4   :  { %v3288_v16 = vpop.f32.mrb[32].mxu0 }
 0x2d5   :  { %v4204_v18 = vadd.f32 %v3288_v16, %v6554_v10  ;;  %v3290_v22 = vpop.f32.mrb[33].mxu0 }
 0x2d6   :  { %v4205_v32 = vadd.f32 %v3290_v22, %v6558_v14  ;;  %v3292_v23 = vpop.f32.mrb[34].mxu0 }
 0x2d7   :  { %v4206_v9 = vadd.f32 %v3292_v23, %v6554_v10  ;;  %v3294_v42 = vpop.f32.mrb[35].mxu0  ;;  %v3367_v58 = vmax.f32 %v4204_v18, 0.0 }
 0x2d8   :  { %v4207_v40 = vadd.f32 %v3294_v42, %v6558_v14  ;;  %v3368_v43 = vmax.f32 %v4205_v32, 0.0 }
 0x2d9   :  { %v3369_v33 = vmax.f32 %v4206_v9, 0.0 }
 0x2da   :  { %v3370_v34 = vmax.f32 %v4207_v40, 0.0 }
 0x2db   :  { %v3399_v60 = vpack.c.bf16 %v3369_v33, %v3367_v58 }
 0x2dc   :  { %v3400_v41 = vpack.c.bf16 %v3370_v34, %v3368_v43  ;;  %v3298_v47 = vpop.f32.mrb[36].mxu0 }
 0x2dd   :  { %v4208_v35 = vadd.f32 %v3298_v47, %v6554_v10  ;;  %v3300_v24 = vpop.f32.mrb[37].mxu0 }
 0x2de   :  { %v4209_v46 = vadd.f32 %v3300_v24, %v6558_v14  ;;  %v3302_v44 = vpop.f32.mrb[38].mxu0  ;;  %3582 = vmatprep.mubr.bf16.mxu0 %v3400_v41 }
 0x2df   :  { %v4210_v25 = vadd.f32 %v3302_v44, %v6554_v10  ;;  %v3304_v62 = vpop.f32.mrb[39].mxu0  ;;  %3583 = vmatmul.mubr.bf16.vlgmr.msra.gmra.mrb[64].mxu0 %v3399_v60  ;;  %v3371_v45 = vmax.f32 %v4208_v35, 0.0 }
 0x2e0   :  { %v4211_v26 = vadd.f32 %v3304_v62, %v6558_v14  ;;  %v3372_v13 = vmax.f32 %v4209_v46, 0.0 }
 0x2e1   :  { %v3373_v36 = vmax.f32 %v4210_v25, 0.0 }
 0x2e2   :  { %v3374_v63 = vmax.f32 %v4211_v26, 0.0 }
 0x2e3   :  { %v3401_v37 = vpack.c.bf16 %v3373_v36, %v3371_v45 }
 0x2e4   :  { %v3402_v38 = vpack.c.bf16 %v3374_v63, %v3372_v13  ;;  %v3308_v49 = vpop.f32.mrb[40].mxu0 }
 0x2e5   :  { %v4212_v51 = vadd.f32 %v3308_v49, %v6554_v10  ;;  %v3310_v50 = vpop.f32.mrb[41].mxu0 }
 0x2e6   :  { %v4213_v57 = vadd.f32 %v3310_v50, %v6558_v14  ;;  %v3312_v52 = vpop.f32.mrb[42].mxu0  ;;  %3590 = vmatprep.mubr.bf16.mxu0 %v3402_v38 }
 0x2e7   :  { %v4214_v56 = vadd.f32 %v3312_v52, %v6554_v10  ;;  %v3314_v59 = vpop.f32.mrb[43].mxu0  ;;  %3591 = vmatmul.mubr.bf16.gmra.mrb[68].mxu0 %v3401_v37  ;;  %v3375_v11 = vmax.f32 %v4212_v51, 0.0 }
 0x2e8   :  { %v4215_v3 = vadd.f32 %v3314_v59, %v6558_v14  ;;  %v3376_v12 = vmax.f32 %v4213_v57, 0.0 }
 0x2e9   :  { %v3377_v61 = vmax.f32 %v4214_v56, 0.0 }
 0x2ea   :  { %v3378_v54 = vmax.f32 %v4215_v3, 0.0 }
 0x2eb   :  { %v3403_v17 = vpack.c.bf16 %v3377_v61, %v3375_v11 }
 0x2ec   :  { %v3404_v39 = vpack.c.bf16 %v3378_v54, %v3376_v12  ;;  %v3318_v28 = vpop.f32.mrb[44].mxu0 }
 0x2ed   :  { %v4216_v1 = vadd.f32 %v3318_v28, %v6554_v10  ;;  %v3320_v53 = vpop.f32.mrb[45].mxu0 }
 0x2ee   :  { %v4217_v5 = vadd.f32 %v3320_v53, %v6558_v14  ;;  %v3322_v29 = vpop.f32.mrb[46].mxu0  ;;  %3598 = vmatprep.mubr.bf16.mxu1 %v3404_v39 }
 0x2ef   :  { %v4218_v2 = vadd.f32 %v3322_v29, %v6554_v10  ;;  %v3324_v48 = vpop.f32.mrb[47].mxu0  ;;  %3599 = vmatmul.mubr.bf16.vlgmr.msra.gmra.mrb[64].mxu1 %v3403_v17  ;;  %v3379_v19 = vmax.f32 %v4216_v1, 0.0 }
 0x2f0   :  { %v4219_v20 = vadd.f32 %v3324_v48, %v6558_v14  ;;  %v3380_v0 = vmax.f32 %v4217_v5, 0.0 }
 0x2f1   :  { %v3381_v55 = vmax.f32 %v4218_v2, 0.0 }
 0x2f2   :  { %v3382_v30 = vmax.f32 %v4219_v20, 0.0 }
 0x2f3   :  { %v3405_v31 = vpack.c.bf16 %v3381_v55, %v3379_v19  ;;  %v6595_v55 = vld [vmem:[%s6667_s6] ss:$0 sm:$0xff] }
 0x2f4   :  { %v3406_v15 = vpack.c.bf16 %v3382_v30, %v3380_v0  ;;  %v3328_v6 = vpop.f32.mrb[48].mxu0 }
 0x2f5   :  { %v4220_v21 = vadd.f32 %v3328_v6, %v6554_v10  ;;  %v3330_v7 = vpop.f32.mrb[49].mxu0 }
 0x2f6   :  { %v4221_v4 = vadd.f32 %v3330_v7, %v6558_v14  ;;  %v3332_v27 = vpop.f32.mrb[50].mxu0  ;;  %3606 = vmatprep.mubr.bf16.mxu1 %v3406_v15 }
 0x2f7   :  { %v4222_v8 = vadd.f32 %v3332_v27, %v6554_v10  ;;  %v3334_v16 = vpop.f32.mrb[51].mxu0  ;;  %3607 = vmatmul.mubr.bf16.gmra.mrb[68].mxu1 %v3405_v31  ;;  %v3383_v22 = vmax.f32 %v4220_v21, 0.0 }
 0x2f8   :  { %v4223_v18 = vadd.f32 %v3334_v16, %v6558_v14  ;;  %v3384_v23 = vmax.f32 %v4221_v4, 0.0 }
 0x2f9   :  { %v3385_v32 = vmax.f32 %v4222_v8, 0.0 }
 0x2fa   :  { %v3386_v9 = vmax.f32 %v4223_v18, 0.0 }
 0x2fb   :  { %v3407_v42 = vpack.c.bf16 %v3385_v32, %v3383_v22 }
 0x2fc   :  { %v3408_v40 = vpack.c.bf16 %v3386_v9, %v3384_v23  ;;  %v3338_v58 = vpop.f32.mrb[52].mxu0 }
 0x2fd   :  { %v4224_v33 = vadd.f32 %v3338_v58, %v6554_v10  ;;  %v3340_v43 = vpop.f32.mrb[53].mxu0 }
 0x2fe   :  { %v4225_v34 = vadd.f32 %v3340_v43, %v6558_v14  ;;  %v3342_v60 = vpop.f32.mrb[54].mxu0  ;;  %3614 = vmatprep.mubr.bf16.mxu1 %v3408_v40 }
 0x2ff   :  { %v4226_v41 = vadd.f32 %v3342_v60, %v6554_v10  ;;  %v3344_v47 = vpop.f32.mrb[55].mxu0  ;;  %3615 = vmatmul.mubr.bf16.gmra.mrb[72].mxu1 %v3407_v42  ;;  %v3387_v24 = vmax.f32 %v4224_v33, 0.0 }
 0x300   :  { %v4227_v35 = vadd.f32 %v3344_v47, %v6558_v14  ;;  %v3388_v44 = vmax.f32 %v4225_v34, 0.0 }
 0x301   :  { %v3389_v46 = vmax.f32 %v4226_v41, 0.0 }
 0x302   :  { %v3390_v25 = vmax.f32 %v4227_v35, 0.0 }
 0x303   :  { %v3409_v62 = vpack.c.bf16 %v3389_v46, %v3387_v24 }
 0x304   :  { %v3410_v26 = vpack.c.bf16 %v3390_v25, %v3388_v44  ;;  %v3348_v45 = vpop.f32.mrb[56].mxu0 }
 0x305   :  { %v4228_v36 = vadd.f32 %v3348_v45, %v6554_v10  ;;  %v3350_v13 = vpop.f32.mrb[57].mxu0 }
 0x306   :  { %v4229_v63 = vadd.f32 %v3350_v13, %v6558_v14  ;;  %v3352_v37 = vpop.f32.mrb[58].mxu0  ;;  %3622 = vmatprep.mubr.bf16.mxu1 %v3410_v26 }
 0x307   :  { %v4230_v38 = vadd.f32 %v3352_v37, %v6554_v10  ;;  %v3354_v49 = vpop.f32.mrb[59].mxu0  ;;  %3623 = vmatmul.mubr.bf16.gmra.mrb[76].mxu1 %v3409_v62  ;;  %v3391_v50 = vmax.f32 %v4228_v36, 0.0 }
 0x308   :  { %v4231_v51 = vadd.f32 %v3354_v49, %v6558_v14  ;;  %v3392_v52 = vmax.f32 %v4229_v63, 0.0 }
 0x309   :  { %v3393_v57 = vmax.f32 %v4230_v38, 0.0 }
 0x30a   :  { %v3394_v56 = vmax.f32 %v4231_v51, 0.0 }
 0x30b   :  { %v3411_v59 = vpack.c.bf16 %v3393_v57, %v3391_v50 }
 0x30c   :  { %v3412_v3 = vpack.c.bf16 %v3394_v56, %v3392_v52  ;;  %v3358_v11 = vpop.f32.mrb[60].mxu0 }
 0x30d   :  { %v4232_v61 = vadd.f32 %v3358_v11, %v6554_v10  ;;  %v3360_v12 = vpop.f32.mrb[61].mxu0 }
 0x30e   :  { %v4233_v54 = vadd.f32 %v3360_v12, %v6558_v14  ;;  %v3362_v17 = vpop.f32.mrb[62].mxu0  ;;  %3630 = vmatprep.mubr.bf16.mxu1 %v3412_v3 }
 0x30f   :  { %v4234_v39 = vadd.f32 %v3362_v17, %v6554_v10  ;;  %v3364_v28 = vpop.f32.mrb[63].mxu0  ;;  %3631 = vmatmul.mubr.bf16.gmra.mrb[80].mxu1 %v3411_v59  ;;  %v3395_v53 = vmax.f32 %v4232_v61, 0.0 }
 0x310   :  { %v4235_v1 = vadd.f32 %v3364_v28, %v6558_v14  ;;  %v3396_v29 = vmax.f32 %v4233_v54, 0.0 }
 0x311   :  { %v3397_v5 = vmax.f32 %v4234_v39, 0.0 }
 0x312   :  { %v3398_v2 = vmax.f32 %v4235_v1, 0.0 }
 0x313   :  { %v3413_v48 = vpack.c.bf16 %v3397_v5, %v3395_v53 }
 0x314   :  { %v3414_v20 = vpack.c.bf16 %v3398_v2, %v3396_v29 }
 0x316   :  { %3638 = vmatprep.mubr.bf16.mxu1 %v3414_v20 }
 0x317   :  { %3639 = vmatmul.mubr.bf16.gmra.mrb[84].mxu1 %v3413_v48 }
 0x3b2   :  { %v4044_v19 = vpop.f32.mrb[64].mxu0 }
 0x3b3   :  { %v4045_v0 = vpop.f32.mrb[65].mxu0 }
 0x3b4   :  { %v4046_v10 = vadd.f32 %v4045_v0, %v4044_v19  ;;  %v4047_v30 = vpop.f32.mrb[66].mxu0 }
 0x3b5   :  { %v4048_v31 = vpop.f32.mrb[67].mxu0 }
 0x3b6   :  { %v3585_v14 = vadd.f32 %v4046_v10, %v6595_v55  ;;  %v4049_v15 = vadd.f32 %v4048_v31, %v4047_v30 }
 0x3b8   :  { %3647 = vst [vmem:[%s6668_s7] sm:$0xff] %v3585_v14  ;;  %v3588_v6 = vadd.f32 %v4049_v15, %v6595_v55 }
 0x3ba   :  { %3648 = vst [vmem:[%s6668_s7 + $0x8] sm:$0xff] %v3588_v6  ;;  %v4050_v21 = vpop.f32.mrb[68].mxu0 }
 0x3bb   :  { %v4051_v7 = vpop.f32.mrb[69].mxu0 }
 0x3bc   :  { %v4052_v4 = vadd.f32 %v4051_v7, %v4050_v21  ;;  %v4053_v27 = vpop.f32.mrb[70].mxu0 }
 0x3bd   :  { %v4054_v8 = vpop.f32.mrb[71].mxu0 }
 0x3be   :  { %v3593_v16 = vadd.f32 %v4052_v4, %v6595_v55  ;;  %v4055_v18 = vadd.f32 %v4054_v8, %v4053_v27 }
 0x3c0   :  { %3649 = vst [vmem:[%s6668_s7 + $0x10] sm:$0xff] %v3593_v16  ;;  %v3596_v22 = vadd.f32 %v4055_v18, %v6595_v55 }
 0x3c2   :  { %3650 = vst [vmem:[%s6668_s7 + $0x18] sm:$0xff] %v3596_v22  ;;  %v4056_v32 = vpop.f32.mrb[64].mxu1 }
 0x3c3   :  { %v4057_v23 = vpop.f32.mrb[65].mxu1 }
 0x3c4   :  { %v4058_v9 = vadd.f32 %v4057_v23, %v4056_v32  ;;  %v4059_v42 = vpop.f32.mrb[66].mxu1 }
 0x3c5   :  { %v4060_v40 = vpop.f32.mrb[67].mxu1 }
 0x3c6   :  { %v3601_v58 = vadd.f32 %v4058_v9, %v6595_v55  ;;  %v4061_v33 = vadd.f32 %v4060_v40, %v4059_v42 }
 0x3c8   :  { %3651 = vst [vmem:[%s6668_s7 + $0x20] sm:$0xff] %v3601_v58  ;;  %v3604_v43 = vadd.f32 %v4061_v33, %v6595_v55 }
 0x3ca   :  { %3652 = vst [vmem:[%s6668_s7 + $0x28] sm:$0xff] %v3604_v43  ;;  %v4062_v34 = vpop.f32.mrb[68].mxu1 }
 0x3cb   :  { %v4063_v60 = vpop.f32.mrb[69].mxu1 }
 0x3cc   :  { %v4064_v41 = vadd.f32 %v4063_v60, %v4062_v34  ;;  %v4065_v47 = vpop.f32.mrb[70].mxu1 }
 0x3cd   :  { %v4066_v35 = vpop.f32.mrb[71].mxu1 }
 0x3ce   :  { %v3609_v24 = vadd.f32 %v4064_v41, %v6595_v55  ;;  %v4067_v46 = vadd.f32 %v4066_v35, %v4065_v47 }
 0x3d0   :  { %3653 = vst [vmem:[%s6668_s7 + $0x30] sm:$0xff] %v3609_v24  ;;  %v3612_v44 = vadd.f32 %v4067_v46, %v6595_v55 }
 0x3d2   :  { %3654 = vst [vmem:[%s6668_s7 + $0x38] sm:$0xff] %v3612_v44  ;;  %v4068_v25 = vpop.f32.mrb[72].mxu1 }
 0x3d3   :  { %v4069_v62 = vpop.f32.mrb[73].mxu1 }
 0x3d4   :  { %v4070_v26 = vadd.f32 %v4069_v62, %v4068_v25  ;;  %v4071_v45 = vpop.f32.mrb[74].mxu1 }
 0x3d5   :  { %v4072_v36 = vpop.f32.mrb[75].mxu1 }
 0x3d6   :  { %v3617_v13 = vadd.f32 %v4070_v26, %v6595_v55  ;;  %v4073_v63 = vadd.f32 %v4072_v36, %v4071_v45 }
 0x3d8   :  { %3655 = vst [vmem:[%s6668_s7 + $0x40] sm:$0xff] %v3617_v13  ;;  %v3620_v37 = vadd.f32 %v4073_v63, %v6595_v55 }
 0x3da   :  { %3656 = vst [vmem:[%s6668_s7 + $0x48] sm:$0xff] %v3620_v37  ;;  %v4074_v38 = vpop.f32.mrb[76].mxu1 }
 0x3db   :  { %v4075_v49 = vpop.f32.mrb[77].mxu1 }
 0x3dc   :  { %v4076_v51 = vadd.f32 %v4075_v49, %v4074_v38  ;;  %v4077_v50 = vpop.f32.mrb[78].mxu1 }
 0x3dd   :  { %v4078_v57 = vpop.f32.mrb[79].mxu1 }
 0x3de   :  { %v3625_v52 = vadd.f32 %v4076_v51, %v6595_v55  ;;  %v4079_v56 = vadd.f32 %v4078_v57, %v4077_v50 }
 0x3e0   :  { %3657 = vst [vmem:[%s6668_s7 + $0x50] sm:$0xff] %v3625_v52  ;;  %v3628_v59 = vadd.f32 %v4079_v56, %v6595_v55 }
 0x3e2   :  { %3658 = vst [vmem:[%s6668_s7 + $0x58] sm:$0xff] %v3628_v59  ;;  %v4080_v3 = vpop.f32.mrb[80].mxu1 }
 0x3e3   :  { %v4081_v11 = vpop.f32.mrb[81].mxu1 }
 0x3e4   :  { %v4082_v61 = vadd.f32 %v4081_v11, %v4080_v3  ;;  %v4083_v12 = vpop.f32.mrb[82].mxu1 }
 0x3e5   :  { %v4084_v54 = vpop.f32.mrb[83].mxu1 }
 0x3e6   :  { %v3633_v17 = vadd.f32 %v4082_v61, %v6595_v55  ;;  %v4085_v39 = vadd.f32 %v4084_v54, %v4083_v12 }
 0x3e8   :  { %3659 = vst [vmem:[%s6668_s7 + $0x60] sm:$0xff] %v3633_v17  ;;  %v3636_v28 = vadd.f32 %v4085_v39, %v6595_v55 }
 0x3ea   :  { %3660 = vst [vmem:[%s6668_s7 + $0x68] sm:$0xff] %v3636_v28  ;;  %v4086_v1 = vpop.f32.mrb[84].mxu1 }
 0x3eb   :  { %v4087_v53 = vpop.f32.mrb[85].mxu1 }
 0x3ec   :  { %v4088_v5 = vadd.f32 %v4087_v53, %v4086_v1  ;;  %v4089_v29 = vpop.f32.mrb[86].mxu1 }
 0x3ed   :  { %v4090_v2 = vpop.f32.mrb[87].mxu1 }
 0x3ee   :  { %v3641_v48 = vadd.f32 %v4088_v5, %v6595_v55  ;;  %v4091_v20 = vadd.f32 %v4090_v2, %v4089_v29 }
 0x3f0   :  { %3661 = vst [vmem:[%s6668_s7 + $0x70] sm:$0xff] %v3641_v48  ;;  %v3644_v19 = vadd.f32 %v4091_v20, %v6595_v55 }
 0x3f2   :  { %3662 = vst [vmem:[%s6668_s7 + $0x78] sm:$0xff] %v3644_v19 }

</bundles_post_ra>
